<compile_context>
chip_gen: v6e
topology: v6e:2x2x1
jax: 0.10.0
libtpu: 0.0.40
codegen_flags: <defaults>
</compile_context>

<pallas_src>
import functools
import math

import jax
import jax.numpy as jnp
from jax.experimental import pallas as pl
from jax.experimental.pallas import tpu as pltpu


CFG = dict(vocab=128, max_pos=64, type_vocab=2, hidden=32, heads=4,
           intermediate=64, layers=2)
LN_EPS = 1e-12


# ---------------------------------------------------------------------------
# In-kernel helpers
# ---------------------------------------------------------------------------

def _ln(x, g, b, eps):
    mu = jnp.mean(x, axis=-1, keepdims=True)
    xc = x - mu
    var = jnp.mean(xc * xc, axis=-1, keepdims=True)
    return xc * jax.lax.rsqrt(var + eps) * g + b


def _gelu(x):
    # BERT uses exact (erf) GELU.
    return 0.5 * x * (1.0 + jax.lax.erf(x * (1.0 / math.sqrt(2.0))))


def _split_rows(x, B, S):
    """[B*S, C] -> [B, S, C] via aligned row slices + leading-dim stack."""
    return jnp.stack([x[b * S:(b + 1) * S, :] for b in range(B)], axis=0)


def _merge_rows(x3, B):
    """[B, S, C] -> [B*S, C] via leading-dim concat."""
    return jnp.concatenate([x3[b] for b in range(B)], axis=0)


# ---------------------------------------------------------------------------
# Fused encoder kernel: single invocation, weights fully VMEM-resident,
# static unrolled layer loop, activation kept as a VMEM-resident value.
# ---------------------------------------------------------------------------

def _encoder_kernel(
    emb_ref, emb_g_ref, emb_b_ref,
    qkv_w_ref, o_w_ref, ff1_w_ref, ff2_w_ref, bias_ref,
    pool_w_ref, pool_b_ref,
    hidden_ref, pooled_ref,
    *, L, B, S, nh, hd, inter, eps):
    H = nh * hd
    scale = 1.0 / math.sqrt(hd)

    # Embedding LayerNorm seeds the activation.
    h = _ln(emb_ref[...], emb_g_ref[...], emb_b_ref[...], eps)          # [B*S, H]

    for l in range(L):                 # static unroll; weights already resident
        bias = bias_ref[l]             # [8, Wb] bias/LN slab for this layer
        qkv_b = bias[0:1, :3 * H]
        o_b   = bias[1:2, :H]
        aln_g = bias[2:3, :H]
        aln_b = bias[3:4, :H]
        ff1_b = bias[4:5, :inter]
        ff2_b = bias[5:6, :H]
        oln_g = bias[6:7, :H]
        oln_b = bias[7:8, :H]

        # ---- self-attention: fused QKV projection (single [H,3H] MXU matmul)
        qkv = (jnp.dot(h, qkv_w_ref[l], preferred_element_type=jnp.float32)
               + qkv_b)                                                  # [B*S, 3H]
        qkv3 = _split_rows(qkv, B, S)                                    # [B, S, 3H]

        head_ctx = []
        for hh in range(nh):           # heads unrolled; each head batched over B
            c = hh * hd
            q_h = qkv3[:, :, c:c + hd]                                   # [B, S, hd]
            k_h = qkv3[:, :, H + c:H + c + hd]                           # [B, S, hd]
            v_h = qkv3[:, :, 2 * H + c:2 * H + c + hd]                   # [B, S, hd]
            s = jnp.einsum('bqd,bkd->bqk', q_h, k_h,
                           preferred_element_type=jnp.float32) * scale  # [B, S, S]
            m = jnp.max(s, axis=-1, keepdims=True)
            p = jnp.exp(s - m)
            p = p * pl.reciprocal(jnp.sum(p, axis=-1, keepdims=True), approx=True)
            head_ctx.append(jnp.einsum('bqk,bkd->bqd', p, v_h,
                                       preferred_element_type=jnp.float32))
        ctx = _merge_rows(jnp.concatenate(head_ctx, axis=-1), B)         # [B*S, H]

        attn_out = (jnp.dot(ctx, o_w_ref[l], preferred_element_type=jnp.float32)
                    + o_b)
        h = _ln(attn_out + h, aln_g, aln_b, eps)

        # ---- feed-forward ---------------------------------------------------
        ff = _gelu(jnp.dot(h, ff1_w_ref[l], preferred_element_type=jnp.float32)
                   + ff1_b)
        ff = (jnp.dot(ff, ff2_w_ref[l], preferred_element_type=jnp.float32)
              + ff2_b)
        h = _ln(ff + h, oln_g, oln_b, eps)

    hidden_ref[...] = h.astype(hidden_ref.dtype)

    # Pooler on the [CLS] rows: strided sublane read (rows 0, S, 2S, ...).
    cls = hidden_ref[pl.ds(0, B, stride=S), :]                           # [B, H]
    pooled = jnp.tanh(jnp.dot(cls, pool_w_ref[...],
                              preferred_element_type=jnp.float32)
                      + pool_b_ref[...])
    pooled_ref[...] = pooled.astype(pooled_ref.dtype)


# ---------------------------------------------------------------------------
# Tiny-BERT parameters (deterministic synthetic init)
# ---------------------------------------------------------------------------

def init_params(key):
    H = CFG["hidden"]
    I = CFG["intermediate"]

    def nrm(k, shape):
        return 0.02 * jax.random.normal(k, shape, dtype=jnp.float32)

    keys = iter(jax.random.split(key, 8 + CFG["layers"] * 16))
    p = {
        "word_emb": nrm(next(keys), (CFG["vocab"], H)),
        "pos_emb": nrm(next(keys), (CFG["max_pos"], H)),
        "type_emb": nrm(next(keys), (CFG["type_vocab"], H)),
        "emb_ln_g": jnp.ones((H,), jnp.float32),
        "emb_ln_b": jnp.zeros((H,), jnp.float32),
        "pooler_w": nrm(next(keys), (H, H)),
        "pooler_b": jnp.zeros((H,), jnp.float32),
        "layers": [],
    }
    for _ in range(CFG["layers"]):
        layer = {
            "q_w": nrm(next(keys), (H, H)), "q_b": jnp.zeros((H,), jnp.float32),
            "k_w": nrm(next(keys), (H, H)), "k_b": jnp.zeros((H,), jnp.float32),
            "v_w": nrm(next(keys), (H, H)), "v_b": jnp.zeros((H,), jnp.float32),
            "o_w": nrm(next(keys), (H, H)), "o_b": jnp.zeros((H,), jnp.float32),
            "attn_ln_g": jnp.ones((H,), jnp.float32),
            "attn_ln_b": jnp.zeros((H,), jnp.float32),
            "ff1_w": nrm(next(keys), (H, I)), "ff1_b": jnp.zeros((I,), jnp.float32),
            "ff2_w": nrm(next(keys), (I, H)), "ff2_b": jnp.zeros((H,), jnp.float32),
            "out_ln_g": jnp.ones((H,), jnp.float32),
            "out_ln_b": jnp.zeros((H,), jnp.float32),
        }
        p["layers"].append(layer)
    return p


# ---------------------------------------------------------------------------
# Forward pass (BertSerializationEncoder.forward equivalent)
# ---------------------------------------------------------------------------

def bert_serialization_encoder_forward(params, input_ids):
    """input_ids: int32 [B, S] -> (last_hidden_state [B, S, H], pooled [B, H])."""
    B, S = input_ids.shape
    H = CFG["hidden"]
    I = CFG["intermediate"]
    L = CFG["layers"]
    nh = CFG["heads"]
    hd = H // nh
    BS = B * S
    Wb = max(3 * H, I)        # width of the per-layer bias/LN slab

    # Embedding gathers stay in plain JAX (tiny lookup tables; gather is glue).
    word = jnp.take(params["word_emb"], input_ids, axis=0)               # [B, S, H]
    pos = params["pos_emb"][:S][None, :, :]                              # [1, S, H]
    typ = params["type_emb"][0][None, None, :]                           # type id 0
    emb = (word + pos + typ).reshape(BS, H).astype(jnp.float32)

    layers = params["layers"]
    qkv_w = jnp.stack([jnp.concatenate([l["q_w"], l["k_w"], l["v_w"]], axis=1)
                       for l in layers])                                 # [L, H, 3H]
    o_w = jnp.stack([l["o_w"] for l in layers])                          # [L, H, H]
    ff1_w = jnp.stack([l["ff1_w"] for l in layers])                      # [L, H, I]
    ff2_w = jnp.stack([l["ff2_w"] for l in layers])                      # [L, I, H]

    def row(v):
        return jnp.pad(v, (0, Wb - v.shape[0]))

    bias_slab = jnp.stack([
        jnp.stack([row(jnp.concatenate([l["q_b"], l["k_b"], l["v_b"]])),
                   row(l["o_b"]), row(l["attn_ln_g"]), row(l["attn_ln_b"]),
                   row(l["ff1_b"]), row(l["ff2_b"]),
                   row(l["out_ln_g"]), row(l["out_ln_b"])])
        for l in layers])                                                # [L, 8, Wb]

    kernel = functools.partial(_encoder_kernel, L=L, B=B, S=S, nh=nh, hd=hd,
                               inter=I, eps=LN_EPS)

    # Single invocation (no grid): every input is a whole-array VMEM-resident
    # block; the layer loop is unrolled inside the kernel.
    hidden_flat, pooled = pl.pallas_call(
        kernel,
        out_shape=(jax.ShapeDtypeStruct((BS, H), jnp.float32),
                   jax.ShapeDtypeStruct((B, H), jnp.float32)),
        compiler_params=pltpu.CompilerParams(
            vmem_limit_bytes=32 * 1024 * 1024),
    )(emb,
      params["emb_ln_g"][None, :], params["emb_ln_b"][None, :],
      qkv_w, o_w, ff1_w, ff2_w, bias_slab,
      params["pooler_w"], params["pooler_b"][None, :])

    return hidden_flat.reshape(B, S, H), pooled


# ---------------------------------------------------------------------------
# Pure-JAX reference (for correctness check only)
# ---------------------------------------------------------------------------

def _reference_forward(params, input_ids):
    B, S = input_ids.shape
    H = CFG["hidden"]
    nh = CFG["heads"]
    hd = H // nh

    def ln(x, g, b, eps=LN_EPS):
        mu = jnp.mean(x, axis=-1, keepdims=True)
        xc = x - mu
        var = jnp.mean(xc * xc, axis=-1, keepdims=True)
        return xc * jax.lax.rsqrt(var + eps) * g + b

    word = jnp.take(params["word_emb"], input_ids, axis=0)
    pos = params["pos_emb"][:S][None, :, :]
    typ = params["type_emb"][0][None, None, :]
    h = ln(word + pos + typ, params["emb_ln_g"], params["emb_ln_b"])

    for lyr in params["layers"]:
        q = h @ lyr["q_w"] + lyr["q_b"]
        k = h @ lyr["k_w"] + lyr["k_b"]
        v = h @ lyr["v_w"] + lyr["v_b"]
        heads = lambda t: t.reshape(B, S, nh, hd).transpose(0, 2, 1, 3)
        qh, kh, vh = heads(q), heads(k), heads(v)
        s = jnp.einsum("bhqd,bhkd->bhqk", qh, kh) / math.sqrt(hd)
        p = jax.nn.softmax(s, axis=-1)
        ctx = (jnp.einsum("bhqk,bhkd->bhqd", p, vh)
               .transpose(0, 2, 1, 3).reshape(B, S, H))
        attn = ctx @ lyr["o_w"] + lyr["o_b"]
        h = ln(attn + h, lyr["attn_ln_g"], lyr["attn_ln_b"])
        ff = h @ lyr["ff1_w"] + lyr["ff1_b"]
        ff = 0.5 * ff * (1.0 + jax.lax.erf(ff / math.sqrt(2.0)))
        ff = ff @ lyr["ff2_w"] + lyr["ff2_b"]
        h = ln(ff + h, lyr["out_ln_g"], lyr["out_ln_b"])

    pooled = jnp.tanh(h[:, 0, :] @ params["pooler_w"] + params["pooler_b"])
    return h, pooled


if __name__ == "__main__":
    key = jax.random.PRNGKey(0)
    pkey, xkey = jax.random.split(key)
    params = init_params(pkey)

    B, S = 2, 8
    input_ids = jax.random.randint(xkey, (B, S), 0, CFG["vocab"], dtype=jnp.int32)

    fwd = jax.jit(functools.partial(bert_serialization_encoder_forward, params))
    last_hidden, pooled = fwd(input_ids)
    jax.block_until_ready((last_hidden, pooled))

    assert last_hidden.shape == (B, S, CFG["hidden"])
    assert pooled.shape == (B, CFG["hidden"])
    assert bool(jnp.all(jnp.isfinite(last_hidden))) and bool(jnp.all(jnp.isfinite(pooled)))

    ref_hidden, ref_pooled = _reference_forward(params, input_ids)
    assert bool(jnp.allclose(last_hidden, ref_hidden, atol=2e-3, rtol=2e-2))
    assert bool(jnp.allclose(pooled, ref_pooled, atol=2e-3, rtol=2e-2))

    print("KERNEL_OK")
</pallas_src>

<mosaic_0001>
module attributes {stable_mosaic.version = 11 : i64} {
  func.func @_encoder_kernel(%arg0: memref<16x32xf32, #tpu.memory_space<vmem>>, %arg1: memref<1x32xf32, #tpu.memory_space<vmem>>, %arg2: memref<1x32xf32, #tpu.memory_space<vmem>>, %arg3: memref<2x32x96xf32, #tpu.memory_space<vmem>>, %arg4: memref<2x32x32xf32, #tpu.memory_space<vmem>>, %arg5: memref<2x32x64xf32, #tpu.memory_space<vmem>>, %arg6: memref<2x64x32xf32, #tpu.memory_space<vmem>>, %arg7: memref<2x8x96xf32, #tpu.memory_space<vmem>>, %arg8: memref<32x32xf32, #tpu.memory_space<vmem>>, %arg9: memref<1x32xf32, #tpu.memory_space<vmem>>, %arg10: memref<16x32xf32, #tpu.memory_space<vmem>>, %arg11: memref<2x32xf32, #tpu.memory_space<vmem>>) attributes {dimension_semantics = [], scalar_prefetch = 0 : i64, scratch_operands = 0 : i64, tpu.core_type = #tpu.core_type<tc>} {
    %c0 = arith.constant 0 : index
    %c0_0 = arith.constant 0 : index
    %0 = vector.load %arg0[%c0, %c0_0] : memref<16x32xf32, #tpu.memory_space<vmem>>, vector<16x32xf32>
    %c0_1 = arith.constant 0 : index
    %c0_2 = arith.constant 0 : index
    %1 = vector.load %arg1[%c0_1, %c0_2] : memref<1x32xf32, #tpu.memory_space<vmem>>, vector<1x32xf32>
    %c0_3 = arith.constant 0 : index
    %c0_4 = arith.constant 0 : index
    %2 = vector.load %arg2[%c0_3, %c0_4] : memref<1x32xf32, #tpu.memory_space<vmem>>, vector<1x32xf32>
    %cst = arith.constant dense<0.000000e+00> : vector<16xf32>
    %3 = vector.multi_reduction <add>, %0, %cst [1] : vector<16x32xf32> to vector<16xf32>
    %4 = vector.shape_cast %3 : vector<16xf32> to vector<16x1xf32>
    %cst_5 = arith.constant 3.200000e+01 : f32
    %5 = vector.broadcast %cst_5 : f32 to vector<16x1xf32>
    %6 = arith.divf %4, %5 : vector<16x1xf32>
    %7 = vector.broadcast %6 : vector<16x1xf32> to vector<16x32xf32>
    %8 = arith.subf %0, %7 : vector<16x32xf32>
    %9 = arith.mulf %8, %8 : vector<16x32xf32>
    %cst_6 = arith.constant dense<0.000000e+00> : vector<16xf32>
    %10 = vector.multi_reduction <add>, %9, %cst_6 [1] : vector<16x32xf32> to vector<16xf32>
    %11 = vector.shape_cast %10 : vector<16xf32> to vector<16x1xf32>
    %cst_7 = arith.constant 3.200000e+01 : f32
    %12 = vector.broadcast %cst_7 : f32 to vector<16x1xf32>
    %13 = arith.divf %11, %12 : vector<16x1xf32>
    %cst_8 = arith.constant 9.99999996E-13 : f32
    %14 = vector.broadcast %cst_8 : f32 to vector<16x1xf32>
    %15 = arith.addf %13, %14 : vector<16x1xf32>
    %16 = math.rsqrt %15 : vector<16x1xf32>
    %17 = vector.broadcast %16 : vector<16x1xf32> to vector<16x32xf32>
    %18 = arith.mulf %8, %17 : vector<16x32xf32>
    %19 = vector.broadcast %1 : vector<1x32xf32> to vector<16x32xf32>
    %20 = arith.mulf %18, %19 : vector<16x32xf32>
    %21 = vector.broadcast %2 : vector<1x32xf32> to vector<16x32xf32>
    %22 = arith.addf %20, %21 : vector<16x32xf32>
    %c0_9 = arith.constant 0 : index
    %c0_10 = arith.constant 0 : index
    %c0_11 = arith.constant 0 : index
    %23 = vector.load %arg7[%c0_9, %c0_10, %c0_11] : memref<2x8x96xf32, #tpu.memory_space<vmem>>, vector<1x8x96xf32>
    %24 = vector.shape_cast %23 : vector<1x8x96xf32> to vector<8x96xf32>
    %25 = vector.extract_strided_slice %24 {offsets = [0, 0], sizes = [1, 96], strides = [1, 1]} : vector<8x96xf32> to vector<1x96xf32>
    %26 = vector.extract_strided_slice %24 {offsets = [1, 0], sizes = [1, 32], strides = [1, 1]} : vector<8x96xf32> to vector<1x32xf32>
    %27 = vector.extract_strided_slice %24 {offsets = [2, 0], sizes = [1, 32], strides = [1, 1]} : vector<8x96xf32> to vector<1x32xf32>
    %28 = vector.extract_strided_slice %24 {offsets = [3, 0], sizes = [1, 32], strides = [1, 1]} : vector<8x96xf32> to vector<1x32xf32>
    %29 = vector.extract_strided_slice %24 {offsets = [4, 0], sizes = [1, 64], strides = [1, 1]} : vector<8x96xf32> to vector<1x64xf32>
    %30 = vector.extract_strided_slice %24 {offsets = [5, 0], sizes = [1, 32], strides = [1, 1]} : vector<8x96xf32> to vector<1x32xf32>
    %31 = vector.extract_strided_slice %24 {offsets = [6, 0], sizes = [1, 32], strides = [1, 1]} : vector<8x96xf32> to vector<1x32xf32>
    %32 = vector.extract_strided_slice %24 {offsets = [7, 0], sizes = [1, 32], strides = [1, 1]} : vector<8x96xf32> to vector<1x32xf32>
    %c0_12 = arith.constant 0 : index
    %c0_13 = arith.constant 0 : index
    %c0_14 = arith.constant 0 : index
    %33 = vector.load %arg3[%c0_12, %c0_13, %c0_14] : memref<2x32x96xf32, #tpu.memory_space<vmem>>, vector<1x32x96xf32>
    %34 = vector.shape_cast %33 : vector<1x32x96xf32> to vector<32x96xf32>
    %cst_15 = arith.constant dense<0.000000e+00> : vector<16x96xf32>
    %35 = tpu.matmul %22, %34, %cst_15 {dimension_numbers = #tpu.dot_dimension_numbers<[1], [0], [0], [1], [0, 0, 1, 1], [], []>} : vector<16x32xf32>, vector<32x96xf32>, vector<16x96xf32> -> vector<16x96xf32>
    %36 = vector.broadcast %25 : vector<1x96xf32> to vector<16x96xf32>
    %37 = arith.addf %35, %36 : vector<16x96xf32>
    %38 = vector.extract_strided_slice %37 {offsets = [0, 0], sizes = [8, 96], strides = [1, 1]} : vector<16x96xf32> to vector<8x96xf32>
    %39 = vector.extract_strided_slice %37 {offsets = [8, 0], sizes = [8, 96], strides = [1, 1]} : vector<16x96xf32> to vector<8x96xf32>
    %40 = vector.shape_cast %38 : vector<8x96xf32> to vector<1x8x96xf32>
    %41 = vector.shape_cast %39 : vector<8x96xf32> to vector<1x8x96xf32>
    %42 = tpu.concatenate %40, %41 in 0 : vector<1x8x96xf32>, vector<1x8x96xf32> -> vector<2x8x96xf32>
    %43 = vector.extract_strided_slice %42 {offsets = [0, 0, 0], sizes = [2, 8, 8], strides = [1, 1, 1]} : vector<2x8x96xf32> to vector<2x8x8xf32>
    %44 = vector.extract_strided_slice %42 {offsets = [0, 0, 32], sizes = [2, 8, 8], strides = [1, 1, 1]} : vector<2x8x96xf32> to vector<2x8x8xf32>
    %45 = vector.extract_strided_slice %42 {offsets = [0, 0, 64], sizes = [2, 8, 8], strides = [1, 1, 1]} : vector<2x8x96xf32> to vector<2x8x8xf32>
    "tpu.trace_start"() <{level = 10 : i32, message = "bqd,bkd->bqk"}> : () -> ()
    %cst_16 = arith.constant dense<0.000000e+00> : vector<2x8x8xf32>
    %46 = tpu.matmul %43, %44, %cst_16 {dimension_numbers = #tpu.dot_dimension_numbers<[2], [2], [1], [1], [0, 0, 0, 1, 1, 1], [0], [0]>} : vector<2x8x8xf32>, vector<2x8x8xf32>, vector<2x8x8xf32> -> vector<2x8x8xf32>
    "tpu.trace_stop"() : () -> ()
    %cst_17 = arith.constant 0.353553385 : f32
    %47 = vector.broadcast %cst_17 : f32 to vector<2x8x8xf32>
    %48 = arith.mulf %46, %47 : vector<2x8x8xf32>
    %cst_18 = arith.constant dense<0xFF800000> : vector<2x8xf32>
    %49 = vector.multi_reduction <maximumf>, %48, %cst_18 [2] : vector<2x8x8xf32> to vector<2x8xf32>
    %50 = vector.shape_cast %49 : vector<2x8xf32> to vector<2x8x1xf32>
    %51 = vector.broadcast %50 : vector<2x8x1xf32> to vector<2x8x8xf32>
    %52 = arith.subf %48, %51 : vector<2x8x8xf32>
    %53 = math.exp %52 : vector<2x8x8xf32>
    %cst_19 = arith.constant dense<0.000000e+00> : vector<2x8xf32>
    %54 = vector.multi_reduction <add>, %53, %cst_19 [2] : vector<2x8x8xf32> to vector<2x8xf32>
    %55 = vector.shape_cast %54 : vector<2x8xf32> to vector<2x8x1xf32>
    %56 = tpu.reciprocal %55 {approx = true} : vector<2x8x1xf32> -> vector<2x8x1xf32>
    %57 = vector.broadcast %56 : vector<2x8x1xf32> to vector<2x8x8xf32>
    %58 = arith.mulf %53, %57 : vector<2x8x8xf32>
    "tpu.trace_start"() <{level = 10 : i32, message = "bqk,bkd->bqd"}> : () -> ()
    %cst_20 = arith.constant dense<0.000000e+00> : vector<2x8x8xf32>
    %59 = tpu.matmul %58, %45, %cst_20 {dimension_numbers = #tpu.dot_dimension_numbers<[2], [1], [1], [2], [0, 0, 0, 1, 1, 2], [0], [0]>} : vector<2x8x8xf32>, vector<2x8x8xf32>, vector<2x8x8xf32> -> vector<2x8x8xf32>
    "tpu.trace_stop"() : () -> ()
    %60 = vector.extract_strided_slice %42 {offsets = [0, 0, 8], sizes = [2, 8, 8], strides = [1, 1, 1]} : vector<2x8x96xf32> to vector<2x8x8xf32>
    %61 = vector.extract_strided_slice %42 {offsets = [0, 0, 40], sizes = [2, 8, 8], strides = [1, 1, 1]} : vector<2x8x96xf32> to vector<2x8x8xf32>
    %62 = vector.extract_strided_slice %42 {offsets = [0, 0, 72], sizes = [2, 8, 8], strides = [1, 1, 1]} : vector<2x8x96xf32> to vector<2x8x8xf32>
    "tpu.trace_start"() <{level = 10 : i32, message = "bqd,bkd->bqk"}> : () -> ()
    %cst_21 = arith.constant dense<0.000000e+00> : vector<2x8x8xf32>
    %63 = tpu.matmul %60, %61, %cst_21 {dimension_numbers = #tpu.dot_dimension_numbers<[2], [2], [1], [1], [0, 0, 0, 1, 1, 1], [0], [0]>} : vector<2x8x8xf32>, vector<2x8x8xf32>, vector<2x8x8xf32> -> vector<2x8x8xf32>
    "tpu.trace_stop"() : () -> ()
    %cst_22 = arith.constant 0.353553385 : f32
    %64 = vector.broadcast %cst_22 : f32 to vector<2x8x8xf32>
    %65 = arith.mulf %63, %64 : vector<2x8x8xf32>
    %cst_23 = arith.constant dense<0xFF800000> : vector<2x8xf32>
    %66 = vector.multi_reduction <maximumf>, %65, %cst_23 [2] : vector<2x8x8xf32> to vector<2x8xf32>
    %67 = vector.shape_cast %66 : vector<2x8xf32> to vector<2x8x1xf32>
    %68 = vector.broadcast %67 : vector<2x8x1xf32> to vector<2x8x8xf32>
    %69 = arith.subf %65, %68 : vector<2x8x8xf32>
    %70 = math.exp %69 : vector<2x8x8xf32>
    %cst_24 = arith.constant dense<0.000000e+00> : vector<2x8xf32>
    %71 = vector.multi_reduction <add>, %70, %cst_24 [2] : vector<2x8x8xf32> to vector<2x8xf32>
    %72 = vector.shape_cast %71 : vector<2x8xf32> to vector<2x8x1xf32>
    %73 = tpu.reciprocal %72 {approx = true} : vector<2x8x1xf32> -> vector<2x8x1xf32>
    %74 = vector.broadcast %73 : vector<2x8x1xf32> to vector<2x8x8xf32>
    %75 = arith.mulf %70, %74 : vector<2x8x8xf32>
    "tpu.trace_start"() <{level = 10 : i32, message = "bqk,bkd->bqd"}> : () -> ()
    %cst_25 = arith.constant dense<0.000000e+00> : vector<2x8x8xf32>
    %76 = tpu.matmul %75, %62, %cst_25 {dimension_numbers = #tpu.dot_dimension_numbers<[2], [1], [1], [2], [0, 0, 0, 1, 1, 2], [0], [0]>} : vector<2x8x8xf32>, vector<2x8x8xf32>, vector<2x8x8xf32> -> vector<2x8x8xf32>
    "tpu.trace_stop"() : () -> ()
    %77 = vector.extract_strided_slice %42 {offsets = [0, 0, 16], sizes = [2, 8, 8], strides = [1, 1, 1]} : vector<2x8x96xf32> to vector<2x8x8xf32>
    %78 = vector.extract_strided_slice %42 {offsets = [0, 0, 48], sizes = [2, 8, 8], strides = [1, 1, 1]} : vector<2x8x96xf32> to vector<2x8x8xf32>
    %79 = vector.extract_strided_slice %42 {offsets = [0, 0, 80], sizes = [2, 8, 8], strides = [1, 1, 1]} : vector<2x8x96xf32> to vector<2x8x8xf32>
    "tpu.trace_start"() <{level = 10 : i32, message = "bqd,bkd->bqk"}> : () -> ()
    %cst_26 = arith.constant dense<0.000000e+00> : vector<2x8x8xf32>
    %80 = tpu.matmul %77, %78, %cst_26 {dimension_numbers = #tpu.dot_dimension_numbers<[2], [2], [1], [1], [0, 0, 0, 1, 1, 1], [0], [0]>} : vector<2x8x8xf32>, vector<2x8x8xf32>, vector<2x8x8xf32> -> vector<2x8x8xf32>
    "tpu.trace_stop"() : () -> ()
    %cst_27 = arith.constant 0.353553385 : f32
    %81 = vector.broadcast %cst_27 : f32 to vector<2x8x8xf32>
    %82 = arith.mulf %80, %81 : vector<2x8x8xf32>
    %cst_28 = arith.constant dense<0xFF800000> : vector<2x8xf32>
    %83 = vector.multi_reduction <maximumf>, %82, %cst_28 [2] : vector<2x8x8xf32> to vector<2x8xf32>
    %84 = vector.shape_cast %83 : vector<2x8xf32> to vector<2x8x1xf32>
    %85 = vector.broadcast %84 : vector<2x8x1xf32> to vector<2x8x8xf32>
    %86 = arith.subf %82, %85 : vector<2x8x8xf32>
    %87 = math.exp %86 : vector<2x8x8xf32>
    %cst_29 = arith.constant dense<0.000000e+00> : vector<2x8xf32>
    %88 = vector.multi_reduction <add>, %87, %cst_29 [2] : vector<2x8x8xf32> to vector<2x8xf32>
    %89 = vector.shape_cast %88 : vector<2x8xf32> to vector<2x8x1xf32>
    %90 = tpu.reciprocal %89 {approx = true} : vector<2x8x1xf32> -> vector<2x8x1xf32>
    %91 = vector.broadcast %90 : vector<2x8x1xf32> to vector<2x8x8xf32>
    %92 = arith.mulf %87, %91 : vector<2x8x8xf32>
    "tpu.trace_start"() <{level = 10 : i32, message = "bqk,bkd->bqd"}> : () -> ()
    %cst_30 = arith.constant dense<0.000000e+00> : vector<2x8x8xf32>
    %93 = tpu.matmul %92, %79, %cst_30 {dimension_numbers = #tpu.dot_dimension_numbers<[2], [1], [1], [2], [0, 0, 0, 1, 1, 2], [0], [0]>} : vector<2x8x8xf32>, vector<2x8x8xf32>, vector<2x8x8xf32> -> vector<2x8x8xf32>
    "tpu.trace_stop"() : () -> ()
    %94 = vector.extract_strided_slice %42 {offsets = [0, 0, 24], sizes = [2, 8, 8], strides = [1, 1, 1]} : vector<2x8x96xf32> to vector<2x8x8xf32>
    %95 = vector.extract_strided_slice %42 {offsets = [0, 0, 56], sizes = [2, 8, 8], strides = [1, 1, 1]} : vector<2x8x96xf32> to vector<2x8x8xf32>
    %96 = vector.extract_strided_slice %42 {offsets = [0, 0, 88], sizes = [2, 8, 8], strides = [1, 1, 1]} : vector<2x8x96xf32> to vector<2x8x8xf32>
    "tpu.trace_start"() <{level = 10 : i32, message = "bqd,bkd->bqk"}> : () -> ()
    %cst_31 = arith.constant dense<0.000000e+00> : vector<2x8x8xf32>
    %97 = tpu.matmul %94, %95, %cst_31 {dimension_numbers = #tpu.dot_dimension_numbers<[2], [2], [1], [1], [0, 0, 0, 1, 1, 1], [0], [0]>} : vector<2x8x8xf32>, vector<2x8x8xf32>, vector<2x8x8xf32> -> vector<2x8x8xf32>
    "tpu.trace_stop"() : () -> ()
    %cst_32 = arith.constant 0.353553385 : f32
    %98 = vector.broadcast %cst_32 : f32 to vector<2x8x8xf32>
    %99 = arith.mulf %97, %98 : vector<2x8x8xf32>
    %cst_33 = arith.constant dense<0xFF800000> : vector<2x8xf32>
    %100 = vector.multi_reduction <maximumf>, %99, %cst_33 [2] : vector<2x8x8xf32> to vector<2x8xf32>
    %101 = vector.shape_cast %100 : vector<2x8xf32> to vector<2x8x1xf32>
    %102 = vector.broadcast %101 : vector<2x8x1xf32> to vector<2x8x8xf32>
    %103 = arith.subf %99, %102 : vector<2x8x8xf32>
    %104 = math.exp %103 : vector<2x8x8xf32>
    %cst_34 = arith.constant dense<0.000000e+00> : vector<2x8xf32>
    %105 = vector.multi_reduction <add>, %104, %cst_34 [2] : vector<2x8x8xf32> to vector<2x8xf32>
    %106 = vector.shape_cast %105 : vector<2x8xf32> to vector<2x8x1xf32>
    %107 = tpu.reciprocal %106 {approx = true} : vector<2x8x1xf32> -> vector<2x8x1xf32>
    %108 = vector.broadcast %107 : vector<2x8x1xf32> to vector<2x8x8xf32>
    %109 = arith.mulf %104, %108 : vector<2x8x8xf32>
    "tpu.trace_start"() <{level = 10 : i32, message = "bqk,bkd->bqd"}> : () -> ()
    %cst_35 = arith.constant dense<0.000000e+00> : vector<2x8x8xf32>
    %110 = tpu.matmul %109, %96, %cst_35 {dimension_numbers = #tpu.dot_dimension_numbers<[2], [1], [1], [2], [0, 0, 0, 1, 1, 2], [0], [0]>} : vector<2x8x8xf32>, vector<2x8x8xf32>, vector<2x8x8xf32> -> vector<2x8x8xf32>
    "tpu.trace_stop"() : () -> ()
    %111 = tpu.concatenate %59, %76, %93, %110 in 2 : vector<2x8x8xf32>, vector<2x8x8xf32>, vector<2x8x8xf32>, vector<2x8x8xf32> -> vector<2x8x32xf32>
    %112 = vector.extract_strided_slice %111 {offsets = [0, 0, 0], sizes = [1, 8, 32], strides = [1, 1, 1]} : vector<2x8x32xf32> to vector<1x8x32xf32>
    %113 = vector.shape_cast %112 : vector<1x8x32xf32> to vector<8x32xf32>
    %114 = vector.extract_strided_slice %111 {offsets = [1, 0, 0], sizes = [1, 8, 32], strides = [1, 1, 1]} : vector<2x8x32xf32> to vector<1x8x32xf32>
    %115 = vector.shape_cast %114 : vector<1x8x32xf32> to vector<8x32xf32>
    %116 = tpu.concatenate %113, %115 in 0 : vector<8x32xf32>, vector<8x32xf32> -> vector<16x32xf32>
    %c0_36 = arith.constant 0 : index
    %c0_37 = arith.constant 0 : index
    %c0_38 = arith.constant 0 : index
    %117 = vector.load %arg4[%c0_36, %c0_37, %c0_38] : memref<2x32x32xf32, #tpu.memory_space<vmem>>, vector<1x32x32xf32>
    %118 = vector.shape_cast %117 : vector<1x32x32xf32> to vector<32x32xf32>
    %cst_39 = arith.constant dense<0.000000e+00> : vector<16x32xf32>
    %119 = tpu.matmul %116, %118, %cst_39 {dimension_numbers = #tpu.dot_dimension_numbers<[1], [0], [0], [1], [0, 0, 1, 1], [], []>} : vector<16x32xf32>, vector<32x32xf32>, vector<16x32xf32> -> vector<16x32xf32>
    %120 = vector.broadcast %26 : vector<1x32xf32> to vector<16x32xf32>
    %121 = arith.addf %119, %120 : vector<16x32xf32>
    %122 = arith.addf %121, %22 : vector<16x32xf32>
    %cst_40 = arith.constant dense<0.000000e+00> : vector<16xf32>
    %123 = vector.multi_reduction <add>, %122, %cst_40 [1] : vector<16x32xf32> to vector<16xf32>
    %124 = vector.shape_cast %123 : vector<16xf32> to vector<16x1xf32>
    %cst_41 = arith.constant 3.200000e+01 : f32
    %125 = vector.broadcast %cst_41 : f32 to vector<16x1xf32>
    %126 = arith.divf %124, %125 : vector<16x1xf32>
    %127 = vector.broadcast %126 : vector<16x1xf32> to vector<16x32xf32>
    %128 = arith.subf %122, %127 : vector<16x32xf32>
    %129 = arith.mulf %128, %128 : vector<16x32xf32>
    %cst_42 = arith.constant dense<0.000000e+00> : vector<16xf32>
    %130 = vector.multi_reduction <add>, %129, %cst_42 [1] : vector<16x32xf32> to vector<16xf32>
    %131 = vector.shape_cast %130 : vector<16xf32> to vector<16x1xf32>
    %cst_43 = arith.constant 3.200000e+01 : f32
    %132 = vector.broadcast %cst_43 : f32 to vector<16x1xf32>
    %133 = arith.divf %131, %132 : vector<16x1xf32>
    %cst_44 = arith.constant 9.99999996E-13 : f32
    %134 = vector.broadcast %cst_44 : f32 to vector<16x1xf32>
    %135 = arith.addf %133, %134 : vector<16x1xf32>
    %136 = math.rsqrt %135 : vector<16x1xf32>
    %137 = vector.broadcast %136 : vector<16x1xf32> to vector<16x32xf32>
    %138 = arith.mulf %128, %137 : vector<16x32xf32>
    %139 = vector.broadcast %27 : vector<1x32xf32> to vector<16x32xf32>
    %140 = arith.mulf %138, %139 : vector<16x32xf32>
    %141 = vector.broadcast %28 : vector<1x32xf32> to vector<16x32xf32>
    %142 = arith.addf %140, %141 : vector<16x32xf32>
    %c0_45 = arith.constant 0 : index
    %c0_46 = arith.constant 0 : index
    %c0_47 = arith.constant 0 : index
    %143 = vector.load %arg5[%c0_45, %c0_46, %c0_47] : memref<2x32x64xf32, #tpu.memory_space<vmem>>, vector<1x32x64xf32>
    %144 = vector.shape_cast %143 : vector<1x32x64xf32> to vector<32x64xf32>
    %cst_48 = arith.constant dense<0.000000e+00> : vector<16x64xf32>
    %145 = tpu.matmul %142, %144, %cst_48 {dimension_numbers = #tpu.dot_dimension_numbers<[1], [0], [0], [1], [0, 0, 1, 1], [], []>} : vector<16x32xf32>, vector<32x64xf32>, vector<16x64xf32> -> vector<16x64xf32>
    %146 = vector.broadcast %29 : vector<1x64xf32> to vector<16x64xf32>
    %147 = arith.addf %145, %146 : vector<16x64xf32>
    %cst_49 = arith.constant 5.000000e-01 : f32
    %148 = vector.broadcast %cst_49 : f32 to vector<16x64xf32>
    %149 = arith.mulf %148, %147 : vector<16x64xf32>
    %cst_50 = arith.constant 0.707106769 : f32
    %150 = vector.broadcast %cst_50 : f32 to vector<16x64xf32>
    %151 = arith.mulf %147, %150 : vector<16x64xf32>
    %152 = math.erf %151 : vector<16x64xf32>
    %cst_51 = arith.constant 1.000000e+00 : f32
    %153 = vector.broadcast %cst_51 : f32 to vector<16x64xf32>
    %154 = arith.addf %153, %152 : vector<16x64xf32>
    %155 = arith.mulf %149, %154 : vector<16x64xf32>
    %c0_52 = arith.constant 0 : index
    %c0_53 = arith.constant 0 : index
    %c0_54 = arith.constant 0 : index
    %156 = vector.load %arg6[%c0_52, %c0_53, %c0_54] : memref<2x64x32xf32, #tpu.memory_space<vmem>>, vector<1x64x32xf32>
    %157 = vector.shape_cast %156 : vector<1x64x32xf32> to vector<64x32xf32>
    %cst_55 = arith.constant dense<0.000000e+00> : vector<16x32xf32>
    %158 = tpu.matmul %155, %157, %cst_55 {dimension_numbers = #tpu.dot_dimension_numbers<[1], [0], [0], [1], [0, 0, 1, 1], [], []>} : vector<16x64xf32>, vector<64x32xf32>, vector<16x32xf32> -> vector<16x32xf32>
    %159 = vector.broadcast %30 : vector<1x32xf32> to vector<16x32xf32>
    %160 = arith.addf %158, %159 : vector<16x32xf32>
    %161 = arith.addf %160, %142 : vector<16x32xf32>
    %cst_56 = arith.constant dense<0.000000e+00> : vector<16xf32>
    %162 = vector.multi_reduction <add>, %161, %cst_56 [1] : vector<16x32xf32> to vector<16xf32>
    %163 = vector.shape_cast %162 : vector<16xf32> to vector<16x1xf32>
    %cst_57 = arith.constant 3.200000e+01 : f32
    %164 = vector.broadcast %cst_57 : f32 to vector<16x1xf32>
    %165 = arith.divf %163, %164 : vector<16x1xf32>
    %166 = vector.broadcast %165 : vector<16x1xf32> to vector<16x32xf32>
    %167 = arith.subf %161, %166 : vector<16x32xf32>
    %168 = arith.mulf %167, %167 : vector<16x32xf32>
    %cst_58 = arith.constant dense<0.000000e+00> : vector<16xf32>
    %169 = vector.multi_reduction <add>, %168, %cst_58 [1] : vector<16x32xf32> to vector<16xf32>
    %170 = vector.shape_cast %169 : vector<16xf32> to vector<16x1xf32>
    %cst_59 = arith.constant 3.200000e+01 : f32
    %171 = vector.broadcast %cst_59 : f32 to vector<16x1xf32>
    %172 = arith.divf %170, %171 : vector<16x1xf32>
    %cst_60 = arith.constant 9.99999996E-13 : f32
    %173 = vector.broadcast %cst_60 : f32 to vector<16x1xf32>
    %174 = arith.addf %172, %173 : vector<16x1xf32>
    %175 = math.rsqrt %174 : vector<16x1xf32>
    %176 = vector.broadcast %175 : vector<16x1xf32> to vector<16x32xf32>
    %177 = arith.mulf %167, %176 : vector<16x32xf32>
    %178 = vector.broadcast %31 : vector<1x32xf32> to vector<16x32xf32>
    %179 = arith.mulf %177, %178 : vector<16x32xf32>
    %180 = vector.broadcast %32 : vector<1x32xf32> to vector<16x32xf32>
    %181 = arith.addf %179, %180 : vector<16x32xf32>
    %c1 = arith.constant 1 : index
    %c0_61 = arith.constant 0 : index
    %c0_62 = arith.constant 0 : index
    %182 = vector.load %arg7[%c1, %c0_61, %c0_62] : memref<2x8x96xf32, #tpu.memory_space<vmem>>, vector<1x8x96xf32>
    %183 = vector.shape_cast %182 : vector<1x8x96xf32> to vector<8x96xf32>
    %184 = vector.extract_strided_slice %183 {offsets = [0, 0], sizes = [1, 96], strides = [1, 1]} : vector<8x96xf32> to vector<1x96xf32>
    %185 = vector.extract_strided_slice %183 {offsets = [1, 0], sizes = [1, 32], strides = [1, 1]} : vector<8x96xf32> to vector<1x32xf32>
    %186 = vector.extract_strided_slice %183 {offsets = [2, 0], sizes = [1, 32], strides = [1, 1]} : vector<8x96xf32> to vector<1x32xf32>
    %187 = vector.extract_strided_slice %183 {offsets = [3, 0], sizes = [1, 32], strides = [1, 1]} : vector<8x96xf32> to vector<1x32xf32>
    %188 = vector.extract_strided_slice %183 {offsets = [4, 0], sizes = [1, 64], strides = [1, 1]} : vector<8x96xf32> to vector<1x64xf32>
    %189 = vector.extract_strided_slice %183 {offsets = [5, 0], sizes = [1, 32], strides = [1, 1]} : vector<8x96xf32> to vector<1x32xf32>
    %190 = vector.extract_strided_slice %183 {offsets = [6, 0], sizes = [1, 32], strides = [1, 1]} : vector<8x96xf32> to vector<1x32xf32>
    %191 = vector.extract_strided_slice %183 {offsets = [7, 0], sizes = [1, 32], strides = [1, 1]} : vector<8x96xf32> to vector<1x32xf32>
    %c1_63 = arith.constant 1 : index
    %c0_64 = arith.constant 0 : index
    %c0_65 = arith.constant 0 : index
    %192 = vector.load %arg3[%c1_63, %c0_64, %c0_65] : memref<2x32x96xf32, #tpu.memory_space<vmem>>, vector<1x32x96xf32>
    %193 = vector.shape_cast %192 : vector<1x32x96xf32> to vector<32x96xf32>
    %cst_66 = arith.constant dense<0.000000e+00> : vector<16x96xf32>
    %194 = tpu.matmul %181, %193, %cst_66 {dimension_numbers = #tpu.dot_dimension_numbers<[1], [0], [0], [1], [0, 0, 1, 1], [], []>} : vector<16x32xf32>, vector<32x96xf32>, vector<16x96xf32> -> vector<16x96xf32>
    %195 = vector.broadcast %184 : vector<1x96xf32> to vector<16x96xf32>
    %196 = arith.addf %194, %195 : vector<16x96xf32>
    %197 = vector.extract_strided_slice %196 {offsets = [0, 0], sizes = [8, 96], strides = [1, 1]} : vector<16x96xf32> to vector<8x96xf32>
    %198 = vector.extract_strided_slice %196 {offsets = [8, 0], sizes = [8, 96], strides = [1, 1]} : vector<16x96xf32> to vector<8x96xf32>
    %199 = vector.shape_cast %197 : vector<8x96xf32> to vector<1x8x96xf32>
    %200 = vector.shape_cast %198 : vector<8x96xf32> to vector<1x8x96xf32>
    %201 = tpu.concatenate %199, %200 in 0 : vector<1x8x96xf32>, vector<1x8x96xf32> -> vector<2x8x96xf32>
    %202 = vector.extract_strided_slice %201 {offsets = [0, 0, 0], sizes = [2, 8, 8], strides = [1, 1, 1]} : vector<2x8x96xf32> to vector<2x8x8xf32>
    %203 = vector.extract_strided_slice %201 {offsets = [0, 0, 32], sizes = [2, 8, 8], strides = [1, 1, 1]} : vector<2x8x96xf32> to vector<2x8x8xf32>
    %204 = vector.extract_strided_slice %201 {offsets = [0, 0, 64], sizes = [2, 8, 8], strides = [1, 1, 1]} : vector<2x8x96xf32> to vector<2x8x8xf32>
    "tpu.trace_start"() <{level = 10 : i32, message = "bqd,bkd->bqk"}> : () -> ()
    %cst_67 = arith.constant dense<0.000000e+00> : vector<2x8x8xf32>
    %205 = tpu.matmul %202, %203, %cst_67 {dimension_numbers = #tpu.dot_dimension_numbers<[2], [2], [1], [1], [0, 0, 0, 1, 1, 1], [0], [0]>} : vector<2x8x8xf32>, vector<2x8x8xf32>, vector<2x8x8xf32> -> vector<2x8x8xf32>
    "tpu.trace_stop"() : () -> ()
    %cst_68 = arith.constant 0.353553385 : f32
    %206 = vector.broadcast %cst_68 : f32 to vector<2x8x8xf32>
    %207 = arith.mulf %205, %206 : vector<2x8x8xf32>
    %cst_69 = arith.constant dense<0xFF800000> : vector<2x8xf32>
    %208 = vector.multi_reduction <maximumf>, %207, %cst_69 [2] : vector<2x8x8xf32> to vector<2x8xf32>
    %209 = vector.shape_cast %208 : vector<2x8xf32> to vector<2x8x1xf32>
    %210 = vector.broadcast %209 : vector<2x8x1xf32> to vector<2x8x8xf32>
    %211 = arith.subf %207, %210 : vector<2x8x8xf32>
    %212 = math.exp %211 : vector<2x8x8xf32>
    %cst_70 = arith.constant dense<0.000000e+00> : vector<2x8xf32>
    %213 = vector.multi_reduction <add>, %212, %cst_70 [2] : vector<2x8x8xf32> to vector<2x8xf32>
    %214 = vector.shape_cast %213 : vector<2x8xf32> to vector<2x8x1xf32>
    %215 = tpu.reciprocal %214 {approx = true} : vector<2x8x1xf32> -> vector<2x8x1xf32>
    %216 = vector.broadcast %215 : vector<2x8x1xf32> to vector<2x8x8xf32>
    %217 = arith.mulf %212, %216 : vector<2x8x8xf32>
    "tpu.trace_start"() <{level = 10 : i32, message = "bqk,bkd->bqd"}> : () -> ()
    %cst_71 = arith.constant dense<0.000000e+00> : vector<2x8x8xf32>
    %218 = tpu.matmul %217, %204, %cst_71 {dimension_numbers = #tpu.dot_dimension_numbers<[2], [1], [1], [2], [0, 0, 0, 1, 1, 2], [0], [0]>} : vector<2x8x8xf32>, vector<2x8x8xf32>, vector<2x8x8xf32> -> vector<2x8x8xf32>
    "tpu.trace_stop"() : () -> ()
    %219 = vector.extract_strided_slice %201 {offsets = [0, 0, 8], sizes = [2, 8, 8], strides = [1, 1, 1]} : vector<2x8x96xf32> to vector<2x8x8xf32>
    %220 = vector.extract_strided_slice %201 {offsets = [0, 0, 40], sizes = [2, 8, 8], strides = [1, 1, 1]} : vector<2x8x96xf32> to vector<2x8x8xf32>
    %221 = vector.extract_strided_slice %201 {offsets = [0, 0, 72], sizes = [2, 8, 8], strides = [1, 1, 1]} : vector<2x8x96xf32> to vector<2x8x8xf32>
    "tpu.trace_start"() <{level = 10 : i32, message = "bqd,bkd->bqk"}> : () -> ()
    %cst_72 = arith.constant dense<0.000000e+00> : vector<2x8x8xf32>
    %222 = tpu.matmul %219, %220, %cst_72 {dimension_numbers = #tpu.dot_dimension_numbers<[2], [2], [1], [1], [0, 0, 0, 1, 1, 1], [0], [0]>} : vector<2x8x8xf32>, vector<2x8x8xf32>, vector<2x8x8xf32> -> vector<2x8x8xf32>
    "tpu.trace_stop"() : () -> ()
    %cst_73 = arith.constant 0.353553385 : f32
    %223 = vector.broadcast %cst_73 : f32 to vector<2x8x8xf32>
    %224 = arith.mulf %222, %223 : vector<2x8x8xf32>
    %cst_74 = arith.constant dense<0xFF800000> : vector<2x8xf32>
    %225 = vector.multi_reduction <maximumf>, %224, %cst_74 [2] : vector<2x8x8xf32> to vector<2x8xf32>
    %226 = vector.shape_cast %225 : vector<2x8xf32> to vector<2x8x1xf32>
    %227 = vector.broadcast %226 : vector<2x8x1xf32> to vector<2x8x8xf32>
    %228 = arith.subf %224, %227 : vector<2x8x8xf32>
    %229 = math.exp %228 : vector<2x8x8xf32>
    %cst_75 = arith.constant dense<0.000000e+00> : vector<2x8xf32>
    %230 = vector.multi_reduction <add>, %229, %cst_75 [2] : vector<2x8x8xf32> to vector<2x8xf32>
    %231 = vector.shape_cast %230 : vector<2x8xf32> to vector<2x8x1xf32>
    %232 = tpu.reciprocal %231 {approx = true} : vector<2x8x1xf32> -> vector<2x8x1xf32>
    %233 = vector.broadcast %232 : vector<2x8x1xf32> to vector<2x8x8xf32>
    %234 = arith.mulf %229, %233 : vector<2x8x8xf32>
    "tpu.trace_start"() <{level = 10 : i32, message = "bqk,bkd->bqd"}> : () -> ()
    %cst_76 = arith.constant dense<0.000000e+00> : vector<2x8x8xf32>
    %235 = tpu.matmul %234, %221, %cst_76 {dimension_numbers = #tpu.dot_dimension_numbers<[2], [1], [1], [2], [0, 0, 0, 1, 1, 2], [0], [0]>} : vector<2x8x8xf32>, vector<2x8x8xf32>, vector<2x8x8xf32> -> vector<2x8x8xf32>
    "tpu.trace_stop"() : () -> ()
    %236 = vector.extract_strided_slice %201 {offsets = [0, 0, 16], sizes = [2, 8, 8], strides = [1, 1, 1]} : vector<2x8x96xf32> to vector<2x8x8xf32>
    %237 = vector.extract_strided_slice %201 {offsets = [0, 0, 48], sizes = [2, 8, 8], strides = [1, 1, 1]} : vector<2x8x96xf32> to vector<2x8x8xf32>
    %238 = vector.extract_strided_slice %201 {offsets = [0, 0, 80], sizes = [2, 8, 8], strides = [1, 1, 1]} : vector<2x8x96xf32> to vector<2x8x8xf32>
    "tpu.trace_start"() <{level = 10 : i32, message = "bqd,bkd->bqk"}> : () -> ()
    %cst_77 = arith.constant dense<0.000000e+00> : vector<2x8x8xf32>
    %239 = tpu.matmul %236, %237, %cst_77 {dimension_numbers = #tpu.dot_dimension_numbers<[2], [2], [1], [1], [0, 0, 0, 1, 1, 1], [0], [0]>} : vector<2x8x8xf32>, vector<2x8x8xf32>, vector<2x8x8xf32> -> vector<2x8x8xf32>
    "tpu.trace_stop"() : () -> ()
    %cst_78 = arith.constant 0.353553385 : f32
    %240 = vector.broadcast %cst_78 : f32 to vector<2x8x8xf32>
    %241 = arith.mulf %239, %240 : vector<2x8x8xf32>
    %cst_79 = arith.constant dense<0xFF800000> : vector<2x8xf32>
    %242 = vector.multi_reduction <maximumf>, %241, %cst_79 [2] : vector<2x8x8xf32> to vector<2x8xf32>
    %243 = vector.shape_cast %242 : vector<2x8xf32> to vector<2x8x1xf32>
    %244 = vector.broadcast %243 : vector<2x8x1xf32> to vector<2x8x8xf32>
    %245 = arith.subf %241, %244 : vector<2x8x8xf32>
    %246 = math.exp %245 : vector<2x8x8xf32>
    %cst_80 = arith.constant dense<0.000000e+00> : vector<2x8xf32>
    %247 = vector.multi_reduction <add>, %246, %cst_80 [2] : vector<2x8x8xf32> to vector<2x8xf32>
    %248 = vector.shape_cast %247 : vector<2x8xf32> to vector<2x8x1xf32>
    %249 = tpu.reciprocal %248 {approx = true} : vector<2x8x1xf32> -> vector<2x8x1xf32>
    %250 = vector.broadcast %249 : vector<2x8x1xf32> to vector<2x8x8xf32>
    %251 = arith.mulf %246, %250 : vector<2x8x8xf32>
    "tpu.trace_start"() <{level = 10 : i32, message = "bqk,bkd->bqd"}> : () -> ()
    %cst_81 = arith.constant dense<0.000000e+00> : vector<2x8x8xf32>
    %252 = tpu.matmul %251, %238, %cst_81 {dimension_numbers = #tpu.dot_dimension_numbers<[2], [1], [1], [2], [0, 0, 0, 1, 1, 2], [0], [0]>} : vector<2x8x8xf32>, vector<2x8x8xf32>, vector<2x8x8xf32> -> vector<2x8x8xf32>
    "tpu.trace_stop"() : () -> ()
    %253 = vector.extract_strided_slice %201 {offsets = [0, 0, 24], sizes = [2, 8, 8], strides = [1, 1, 1]} : vector<2x8x96xf32> to vector<2x8x8xf32>
    %254 = vector.extract_strided_slice %201 {offsets = [0, 0, 56], sizes = [2, 8, 8], strides = [1, 1, 1]} : vector<2x8x96xf32> to vector<2x8x8xf32>
    %255 = vector.extract_strided_slice %201 {offsets = [0, 0, 88], sizes = [2, 8, 8], strides = [1, 1, 1]} : vector<2x8x96xf32> to vector<2x8x8xf32>
    "tpu.trace_start"() <{level = 10 : i32, message = "bqd,bkd->bqk"}> : () -> ()
    %cst_82 = arith.constant dense<0.000000e+00> : vector<2x8x8xf32>
    %256 = tpu.matmul %253, %254, %cst_82 {dimension_numbers = #tpu.dot_dimension_numbers<[2], [2], [1], [1], [0, 0, 0, 1, 1, 1], [0], [0]>} : vector<2x8x8xf32>, vector<2x8x8xf32>, vector<2x8x8xf32> -> vector<2x8x8xf32>
    "tpu.trace_stop"() : () -> ()
    %cst_83 = arith.constant 0.353553385 : f32
    %257 = vector.broadcast %cst_83 : f32 to vector<2x8x8xf32>
    %258 = arith.mulf %256, %257 : vector<2x8x8xf32>
    %cst_84 = arith.constant dense<0xFF800000> : vector<2x8xf32>
    %259 = vector.multi_reduction <maximumf>, %258, %cst_84 [2] : vector<2x8x8xf32> to vector<2x8xf32>
    %260 = vector.shape_cast %259 : vector<2x8xf32> to vector<2x8x1xf32>
    %261 = vector.broadcast %260 : vector<2x8x1xf32> to vector<2x8x8xf32>
    %262 = arith.subf %258, %261 : vector<2x8x8xf32>
    %263 = math.exp %262 : vector<2x8x8xf32>
    %cst_85 = arith.constant dense<0.000000e+00> : vector<2x8xf32>
    %264 = vector.multi_reduction <add>, %263, %cst_85 [2] : vector<2x8x8xf32> to vector<2x8xf32>
    %265 = vector.shape_cast %264 : vector<2x8xf32> to vector<2x8x1xf32>
    %266 = tpu.reciprocal %265 {approx = true} : vector<2x8x1xf32> -> vector<2x8x1xf32>
    %267 = vector.broadcast %266 : vector<2x8x1xf32> to vector<2x8x8xf32>
    %268 = arith.mulf %263, %267 : vector<2x8x8xf32>
    "tpu.trace_start"() <{level = 10 : i32, message = "bqk,bkd->bqd"}> : () -> ()
    %cst_86 = arith.constant dense<0.000000e+00> : vector<2x8x8xf32>
    %269 = tpu.matmul %268, %255, %cst_86 {dimension_numbers = #tpu.dot_dimension_numbers<[2], [1], [1], [2], [0, 0, 0, 1, 1, 2], [0], [0]>} : vector<2x8x8xf32>, vector<2x8x8xf32>, vector<2x8x8xf32> -> vector<2x8x8xf32>
    "tpu.trace_stop"() : () -> ()
    %270 = tpu.concatenate %218, %235, %252, %269 in 2 : vector<2x8x8xf32>, vector<2x8x8xf32>, vector<2x8x8xf32>, vector<2x8x8xf32> -> vector<2x8x32xf32>
    %271 = vector.extract_strided_slice %270 {offsets = [0, 0, 0], sizes = [1, 8, 32], strides = [1, 1, 1]} : vector<2x8x32xf32> to vector<1x8x32xf32>
    %272 = vector.shape_cast %271 : vector<1x8x32xf32> to vector<8x32xf32>
    %273 = vector.extract_strided_slice %270 {offsets = [1, 0, 0], sizes = [1, 8, 32], strides = [1, 1, 1]} : vector<2x8x32xf32> to vector<1x8x32xf32>
    %274 = vector.shape_cast %273 : vector<1x8x32xf32> to vector<8x32xf32>
    %275 = tpu.concatenate %272, %274 in 0 : vector<8x32xf32>, vector<8x32xf32> -> vector<16x32xf32>
    %c1_87 = arith.constant 1 : index
    %c0_88 = arith.constant 0 : index
    %c0_89 = arith.constant 0 : index
    %276 = vector.load %arg4[%c1_87, %c0_88, %c0_89] : memref<2x32x32xf32, #tpu.memory_space<vmem>>, vector<1x32x32xf32>
    %277 = vector.shape_cast %276 : vector<1x32x32xf32> to vector<32x32xf32>
    %cst_90 = arith.constant dense<0.000000e+00> : vector<16x32xf32>
    %278 = tpu.matmul %275, %277, %cst_90 {dimension_numbers = #tpu.dot_dimension_numbers<[1], [0], [0], [1], [0, 0, 1, 1], [], []>} : vector<16x32xf32>, vector<32x32xf32>, vector<16x32xf32> -> vector<16x32xf32>
    %279 = vector.broadcast %185 : vector<1x32xf32> to vector<16x32xf32>
    %280 = arith.addf %278, %279 : vector<16x32xf32>
    %281 = arith.addf %280, %181 : vector<16x32xf32>
    %cst_91 = arith.constant dense<0.000000e+00> : vector<16xf32>
    %282 = vector.multi_reduction <add>, %281, %cst_91 [1] : vector<16x32xf32> to vector<16xf32>
    %283 = vector.shape_cast %282 : vector<16xf32> to vector<16x1xf32>
    %cst_92 = arith.constant 3.200000e+01 : f32
    %284 = vector.broadcast %cst_92 : f32 to vector<16x1xf32>
    %285 = arith.divf %283, %284 : vector<16x1xf32>
    %286 = vector.broadcast %285 : vector<16x1xf32> to vector<16x32xf32>
    %287 = arith.subf %281, %286 : vector<16x32xf32>
    %288 = arith.mulf %287, %287 : vector<16x32xf32>
    %cst_93 = arith.constant dense<0.000000e+00> : vector<16xf32>
    %289 = vector.multi_reduction <add>, %288, %cst_93 [1] : vector<16x32xf32> to vector<16xf32>
    %290 = vector.shape_cast %289 : vector<16xf32> to vector<16x1xf32>
    %cst_94 = arith.constant 3.200000e+01 : f32
    %291 = vector.broadcast %cst_94 : f32 to vector<16x1xf32>
    %292 = arith.divf %290, %291 : vector<16x1xf32>
    %cst_95 = arith.constant 9.99999996E-13 : f32
    %293 = vector.broadcast %cst_95 : f32 to vector<16x1xf32>
    %294 = arith.addf %292, %293 : vector<16x1xf32>
    %295 = math.rsqrt %294 : vector<16x1xf32>
    %296 = vector.broadcast %295 : vector<16x1xf32> to vector<16x32xf32>
    %297 = arith.mulf %287, %296 : vector<16x32xf32>
    %298 = vector.broadcast %186 : vector<1x32xf32> to vector<16x32xf32>
    %299 = arith.mulf %297, %298 : vector<16x32xf32>
    %300 = vector.broadcast %187 : vector<1x32xf32> to vector<16x32xf32>
    %301 = arith.addf %299, %300 : vector<16x32xf32>
    %c1_96 = arith.constant 1 : index
    %c0_97 = arith.constant 0 : index
    %c0_98 = arith.constant 0 : index
    %302 = vector.load %arg5[%c1_96, %c0_97, %c0_98] : memref<2x32x64xf32, #tpu.memory_space<vmem>>, vector<1x32x64xf32>
    %303 = vector.shape_cast %302 : vector<1x32x64xf32> to vector<32x64xf32>
    %cst_99 = arith.constant dense<0.000000e+00> : vector<16x64xf32>
    %304 = tpu.matmul %301, %303, %cst_99 {dimension_numbers = #tpu.dot_dimension_numbers<[1], [0], [0], [1], [0, 0, 1, 1], [], []>} : vector<16x32xf32>, vector<32x64xf32>, vector<16x64xf32> -> vector<16x64xf32>
    %305 = vector.broadcast %188 : vector<1x64xf32> to vector<16x64xf32>
    %306 = arith.addf %304, %305 : vector<16x64xf32>
    %cst_100 = arith.constant 5.000000e-01 : f32
    %307 = vector.broadcast %cst_100 : f32 to vector<16x64xf32>
    %308 = arith.mulf %307, %306 : vector<16x64xf32>
    %cst_101 = arith.constant 0.707106769 : f32
    %309 = vector.broadcast %cst_101 : f32 to vector<16x64xf32>
    %310 = arith.mulf %306, %309 : vector<16x64xf32>
    %311 = math.erf %310 : vector<16x64xf32>
    %cst_102 = arith.constant 1.000000e+00 : f32
    %312 = vector.broadcast %cst_102 : f32 to vector<16x64xf32>
    %313 = arith.addf %312, %311 : vector<16x64xf32>
    %314 = arith.mulf %308, %313 : vector<16x64xf32>
    %c1_103 = arith.constant 1 : index
    %c0_104 = arith.constant 0 : index
    %c0_105 = arith.constant 0 : index
    %315 = vector.load %arg6[%c1_103, %c0_104, %c0_105] : memref<2x64x32xf32, #tpu.memory_space<vmem>>, vector<1x64x32xf32>
    %316 = vector.shape_cast %315 : vector<1x64x32xf32> to vector<64x32xf32>
    %cst_106 = arith.constant dense<0.000000e+00> : vector<16x32xf32>
    %317 = tpu.matmul %314, %316, %cst_106 {dimension_numbers = #tpu.dot_dimension_numbers<[1], [0], [0], [1], [0, 0, 1, 1], [], []>} : vector<16x64xf32>, vector<64x32xf32>, vector<16x32xf32> -> vector<16x32xf32>
    %318 = vector.broadcast %189 : vector<1x32xf32> to vector<16x32xf32>
    %319 = arith.addf %317, %318 : vector<16x32xf32>
    %320 = arith.addf %319, %301 : vector<16x32xf32>
    %cst_107 = arith.constant dense<0.000000e+00> : vector<16xf32>
    %321 = vector.multi_reduction <add>, %320, %cst_107 [1] : vector<16x32xf32> to vector<16xf32>
    %322 = vector.shape_cast %321 : vector<16xf32> to vector<16x1xf32>
    %cst_108 = arith.constant 3.200000e+01 : f32
    %323 = vector.broadcast %cst_108 : f32 to vector<16x1xf32>
    %324 = arith.divf %322, %323 : vector<16x1xf32>
    %325 = vector.broadcast %324 : vector<16x1xf32> to vector<16x32xf32>
    %326 = arith.subf %320, %325 : vector<16x32xf32>
    %327 = arith.mulf %326, %326 : vector<16x32xf32>
    %cst_109 = arith.constant dense<0.000000e+00> : vector<16xf32>
    %328 = vector.multi_reduction <add>, %327, %cst_109 [1] : vector<16x32xf32> to vector<16xf32>
    %329 = vector.shape_cast %328 : vector<16xf32> to vector<16x1xf32>
    %cst_110 = arith.constant 3.200000e+01 : f32
    %330 = vector.broadcast %cst_110 : f32 to vector<16x1xf32>
    %331 = arith.divf %329, %330 : vector<16x1xf32>
    %cst_111 = arith.constant 9.99999996E-13 : f32
    %332 = vector.broadcast %cst_111 : f32 to vector<16x1xf32>
    %333 = arith.addf %331, %332 : vector<16x1xf32>
    %334 = math.rsqrt %333 : vector<16x1xf32>
    %335 = vector.broadcast %334 : vector<16x1xf32> to vector<16x32xf32>
    %336 = arith.mulf %326, %335 : vector<16x32xf32>
    %337 = vector.broadcast %190 : vector<1x32xf32> to vector<16x32xf32>
    %338 = arith.mulf %336, %337 : vector<16x32xf32>
    %339 = vector.broadcast %191 : vector<1x32xf32> to vector<16x32xf32>
    %340 = arith.addf %338, %339 : vector<16x32xf32>
    %c0_112 = arith.constant 0 : index
    %c0_113 = arith.constant 0 : index
    %341 = vector.load %arg10[%c0_112, %c0_113] : memref<16x32xf32, #tpu.memory_space<vmem>>, vector<16x32xf32>
    tpu.vector_store %arg10[%c0_112, %c0_113], %340 {strides = array<i32>} : memref<16x32xf32, #tpu.memory_space<vmem>>, vector<16x32xf32>,
    %c0_114 = arith.constant 0 : index
    %c0_115 = arith.constant 0 : index
    %342 = tpu.strided_load %arg10[%c0_114, %c0_115] {strides = array<i32: 8, 1>} : memref<16x32xf32, #tpu.memory_space<vmem>>, vector<2x32xf32>
    %c0_116 = arith.constant 0 : index
    %c0_117 = arith.constant 0 : index
    %343 = vector.load %arg8[%c0_116, %c0_117] : memref<32x32xf32, #tpu.memory_space<vmem>>, vector<32x32xf32>
    %cst_118 = arith.constant dense<0.000000e+00> : vector<2x32xf32>
    %344 = tpu.matmul %342, %343, %cst_118 {dimension_numbers = #tpu.dot_dimension_numbers<[1], [0], [0], [1], [0, 0, 1, 1], [], []>} : vector<2x32xf32>, vector<32x32xf32>, vector<2x32xf32> -> vector<2x32xf32>
    %c0_119 = arith.constant 0 : index
    %c0_120 = arith.constant 0 : index
    %345 = vector.load %arg9[%c0_119, %c0_120] : memref<1x32xf32, #tpu.memory_space<vmem>>, vector<1x32xf32>
    %346 = vector.broadcast %345 : vector<1x32xf32> to vector<2x32xf32>
    %347 = arith.addf %344, %346 : vector<2x32xf32>
    %348 = math.tanh %347 : vector<2x32xf32>
    %c0_121 = arith.constant 0 : index
    %c0_122 = arith.constant 0 : index
    %349 = vector.load %arg11[%c0_121, %c0_122] : memref<2x32xf32, #tpu.memory_space<vmem>>, vector<2x32xf32>
    tpu.vector_store %arg11[%c0_121, %c0_122], %348 {strides = array<i32>} : memref<2x32xf32, #tpu.memory_space<vmem>>, vector<2x32xf32>,
    return
  }
}

</mosaic_0001>

<bundles_post_ra>
// kernel: bert_serialization_encoder_forward.1
= control target key start
LH: loop header
LB: loop body
LE: loop exit
PB: predicated region body
PF: predicated region fallthrough
CT: control target
= control target key end

     0   :  { %17 = vsyncpa [#allocation3], 0  ;;  %s5214_s0 = inlined_call_operand.vmem [shape: f32[16,32], index: 0, kind: input, shape index: {}]   ;;  %s5215_s1 = inlined_call_operand.vmem [shape: f32[1,32], index: 1, kind: input, shape index: {}]   ;;  %s5216_s2 = inlined_call_operand.vmem [shape: f32[1,32], index: 2, kind: input, shape index: {}, may-alias: {2,9}]   ;;  %s5217_s3 = inlined_call_operand.vmem [shape: f32[2,32,96], index: 3, kind: input, shape index: {}]   ;;  %s5218_s4 = inlined_call_operand.vmem [shape: f32[2,32,32], index: 4, kind: input, shape index: {}]   ;;  %s5219_s5 = inlined_call_operand.hbm [shape: f32[2,32,64], index: 5, kind: input, shape index: {}]   ;;  %s5220_s6 = inlined_call_operand.vmem [shape: f32[2,64,32], index: 6, kind: input, shape index: {}]   ;;  %s5221_s7 = inlined_call_operand.vmem [shape: f32[2,8,96], index: 7, kind: input, shape index: {}]   ;;  %s5222_s8 = inlined_call_operand.hbm [shape: f32[32,32], index: 8, kind: input, shape index: {}]   ;;  %s5223_s9 = inlined_call_operand.vmem [shape: f32[1,32], index: 9, kind: input, shape index: {}, may-alias: {2,9}]   ;;  %s5224_s10 = inlined_call_operand.hbm [shape: f32[16,32], index: 10, kind: output, shape index: {0}]   ;;  %s5225_s11 = inlined_call_operand.hbm [shape: f32[2,32], index: 11, kind: output, shape index: {1}]  }
   0x1   :  { %18 = vsyncpa [#allocation6], 0 }
   0x2   :  { %19 = vsyncpa [#allocation4], 0 }
   0x3   :  { %20 = vsyncpa [#allocation9], 0  ;;  %s4548_s17 = smov [#allocation2]  }
   0x4   :  { %s36_s18 = sshll.u32 %s4548_s17, 4  ;;  %s37_s18 = int_to_ptr.vmem [resolvable:$true] %s36_s18 }
   0x5   :  { %s4468_s19 = scalar_lea.vmem %s37_s18, 1024  ;;  %p4473_p1 = scmp.lt.s32.totalorder %s37_s18, %s37_s18 }
   0x6   :  { %p4469_p0 = scmp.ne.s32.totalorder %s37_s18, %s4468_s19  ;;  %p4474_p2 = scmp.lt.s32.totalorder %s4468_s19, %s4468_s19 }
   0x8   :  { %p4475_p3 = por %p4474_p2, %p4473_p1 }
   0xa   :  { %p4476_p4 = pnand %p4475_p3, %p4469_p0 }
   0xc   :  { %4479 = shalt.err (!%p4476_p4)
}
   0xd   :  { %s4549_s20 = smov 128   ;;  %s4550_s21 = smov 8  }
   0xe   :  { %42 = dma.hbm_to_vmem [thread:$0]  %s5219_s5, 1024, %s37_s18, [#allocation3], %s4549_s20, %s4549_s20, %s4550_s21  }
   0xf   :  { %s4551_s24 = smov [#allocation5]  }
  0x10   :  { %s52_s25 = sshll.u32 %s4551_s24, 4  ;;  %s53_s25 = int_to_ptr.vmem [resolvable:$true] %s52_s25 }
  0x11   :  { %s4488_s26 = scalar_lea.vmem %s53_s25, 512  ;;  %p4493_p6 = scmp.lt.s32.totalorder %s53_s25, %s53_s25 }
  0x12   :  { %p4489_p5 = scmp.ne.s32.totalorder %s53_s25, %s4488_s26  ;;  %p4494_p7 = scmp.lt.s32.totalorder %s4488_s26, %s4488_s26 }
  0x14   :  { %p4495_p8 = por %p4494_p7, %p4493_p6 }
  0x16   :  { %p4496_p9 = pnand %p4495_p8, %p4489_p5 }
  0x18   :  { %4499 = shalt.err (!%p4496_p9)
}
  0x19   :  { %58 = dma.hbm_to_vmem [thread:$0]  %s5222_s8, 512, %s53_s25, [#allocation6], %s4549_s20, %s4549_s20, %s4550_s21  }
  0x1a   :  { %4540 = dma.done.wait [#allocation3], 1024  }
  0x1b   :  { %4541 = vsyncadd [#allocation3], 4294966272 }
  0x1c   :  { %4542 = dma.done.wait [#allocation6], 512  }
  0x1d   :  { %4543 = vsyncadd [#allocation6], 4294966784  ;;  %vm71_vm0 = vcmask 261120   ;;  %v67_v0 = vld [vmem:[%s5214_s0] sm:$0xff]  ;;  %v68_v1 = vld [vmem:[%s5214_s0 + $0x8] sm:$0xff]  ;;  %v120_v34 = vlaneseq  ;;  %v4552_v36 = vmov 0.0  }
  0x1e   :  { %v72_v2 = vsel %vm71_vm0, %v67_v0, 0.0  ;;  %v75_v3 = vsel %vm71_vm0, %v68_v1, 0.0  ;;  %v119_v14 = vld [vmem:[%s5217_s3 + $0x18] sm:$0xff]  ;;  %v118_v15 = vld [vmem:[%s5217_s3 + $0x10] sm:$0xff]  ;;  %v117_v16 = vld [vmem:[%s5217_s3 + $0x8] sm:$0xff]  ;;  %4081 = vmatprep.subr.mxu1 %v4552_v36  ;;  %vm4553_vm1 = vmmov 0  }
  0x1f   :  { %73 = vadd.xlane.f32.xlu0 %v72_v2  ;;  %4070 = vmatprep.subr.mxu0 %v119_v14  ;;  %v116_v17 = vld [vmem:[%s5217_s3] sm:$0xff]  ;;  %v4677_v35 = vshrl.u32 %v120_v34, 7  ;;  %s4554_s25 = smov 96   ;;  %vm208_vm2 = vcmask 64512   ;;  %s4555_s26 = smov 64   ;;  %vm1561_vm3 = vcmask 195584  }
  0x20   :  { %4071 = vmatpush3.msra.mxu0 %v119_v14  ;;  %v3860_v25 = vld [vmem:[%s5215_s1] ss:$0 sm:$0xff]  ;;  %4083 = vmatprep.mubr.msk.f32.mxu1 %vm4553_vm1, %v4552_v36  ;;  %s4556_s27 = smov 88   ;;  %s4557_s28 = smov 120   ;;  %vm1558_vm4 = vcmask 130048   ;;  %vm1804_vm5 = vcmask 523264  }
  0x21   :  { %4072 = vmatprep.subr.mxu0 %v118_v15  ;;  %v3861_v27 = vld [vmem:[%s5216_s2] ss:$0 sm:$0xff]  ;;  %v122_v37 = vsub.s32 0, %v4677_v35  ;;  %s4558_s5 = smov 56   ;;  %s4559_s29 = smov 80  }
  0x22   :  { %4073 = vmatpush3.msra.mxu0 %v118_v15  ;;  %v4689_v38 = vld [vmem:[%s5221_s7] sm:$0xff]  ;;  %s4560_s30 = smov 112   ;;  %s4561_s12 = smov 48  }
  0x23   :  { %76 = vadd.xlane.f32.xlu0 %v75_v3  ;;  %4074 = vmatprep.subr.mxu0 %v117_v16  ;;  %v123_v39 = vrot.slane %v4689_v38, %v122_v37  ;;  %s4562_s0 = smov 72   ;;  %s4563_s8 = smov 104  }
  0x24   :  { %4075 = vmatpush3.msra.mxu0 %v117_v16  ;;  %s4564_s13 = smov 40   ;;  %s4565_s14 = smov 16  }
  0x25   :  { %4076 = vmatprep.subr.mxu0 %v116_v17  ;;  %s4566_s1 = smov 24  }
  0x26   :  { %4077 = vmatpush3.msra.mxu0 %v116_v17 }
  0x27   :  { %4101 = vmatprep.subr.mxu0 %v4552_v36 }
  0xa8   :  { %v74_v4 = vpop.xlane.xlu0 %73 }
  0xa9   :  { %v79_v5 = vmul.f32 0.03125, %v74_v4 }
  0xab   :  { %v81_v6 = vsub.f32 %v67_v0, %v79_v5 }
  0xac   :  { %v77_v7 = vpop.xlane.xlu0 %76 }
  0xad   :  { %v80_v8 = vmul.f32 0.03125, %v77_v7  ;;  %v83_v9 = vmul.f32 %v81_v6, %v81_v6 }
  0xaf   :  { %v82_v10 = vsub.f32 %v68_v1, %v80_v8  ;;  %v85_v11 = vsel %vm71_vm0, %v83_v9, 0.0 }
  0xb0   :  { %86 = vadd.xlane.f32.xlu1 %v85_v11 }
  0xb1   :  { %v84_v12 = vmul.f32 %v82_v10, %v82_v10 }
  0xb3   :  { %v88_v13 = vsel %vm71_vm0, %v84_v12, 0.0 }
  0xb4   :  { %89 = vadd.xlane.f32.xlu1 %v88_v13 }
 0x139   :  { %v87_v18 = vpop.xlane.xlu1 %86 }
 0x13a   :  { %v91_v19 = vmul.f32 0.03125, %v87_v18 }
 0x13c   :  { %v93_v20 = vadd.f32 1e-12, %v91_v19 }
 0x13d   :  { %v90_v21 = vpop.xlane.xlu1 %89 }
 0x13e   :  { %4366 = vrsqrt.f32 %v93_v20  ;;  %v92_v22 = vmul.f32 0.03125, %v90_v21 }
 0x140   :  { %v94_v23 = vadd.f32 1e-12, %v92_v22 }
 0x142   :  { %4368 = vrsqrt.f32 %v94_v23 }
 0x14b   :  { %v4367_v24 = vpop.eup %4366 }
 0x14c   :  { %v97_v26 = vmul.f32 %v4367_v24, %v81_v6 }
 0x14e   :  { %v105_v28 = vmul.f32 %v3860_v25, %v97_v26 }
 0x14f   :  { %v4369_v29 = vpop.eup %4368 }
 0x150   :  { %v98_v30 = vmul.f32 %v4369_v29, %v82_v10  ;;  %v4669_v31 = vadd.f32 %v3861_v27, %v105_v28 }
 0x152   :  { %v106_v32 = vmul.f32 %v3860_v25, %v98_v30  ;;  %4078 = vmatprep.mubr.msk.f32.mxu0 %vm71_vm0, %v4669_v31 }
 0x154   :  { %v4673_v33 = vadd.f32 %v3861_v27, %v106_v32 }
 0x156   :  { %4079 = vmatmul.mubr.msk.f32.vlgmr.msra.gmra.mxu0 %vm71_vm0, %v4673_v33 }
 0x157   :  { %4103 = vmatprep.mubr.msk.f32.mxu0 %vm4553_vm1, %v4552_v36 }
 0x216   :  { %v4080_v40 = vpop.f32.mrf.mxu0 }
 0x217   :  { %v4694_v41 = vadd.f32 %v4080_v40, %v123_v39 }
 0x218   :  { %v196_v42 = vpop.f32.mrf.mxu0 }
 0x219   :  { %v4696_v43 = vadd.f32 %v196_v42, %v123_v39  ;;  %284 = vrot.lane.b32.xlu1 %v4694_v41, %s4554_s25 }
 0x21b   :  { %206 = vrot.lane.b32.xlu0 %v4696_v43, %s4554_s25 }
 0x28b   :  { %v285_v45 = vpop.permute.xlu1 %284 }
 0x28d   :  { %v207_v44 = vpop.permute.xlu0 %206 }
 0x28e   :  { %4082 = vmatpush3.xpose.msk.msra.mxu1 %vm208_vm2, %v207_v44 }
 0x28f   :  { %4086 = vmatprep.subr.mxu1 %v4552_v36 }
 0x291   :  { %4084 = vmatmul.mubr.msk.f32.vlgmr.msra.gmra.mxu1 %vm208_vm2, %v4696_v43 }
 0x292   :  { %4087 = vmatpush3.xpose.msk.msra.mxu1 %vm208_vm2, %v285_v45  ;;  %4088 = vmatprep.mubr.msk.f32.mxu1 %vm4553_vm1, %v4552_v36 }
 0x293   :  { %4091 = vmatprep.subr.mxu1 %v4552_v36 }
 0x295   :  { %4089 = vmatmul.mubr.msk.f32.vlgmr.msra.gmra.mxu1 %vm208_vm2, %v4694_v41 }
 0x296   :  { %4093 = vmatprep.mubr.msk.f32.mxu1 %vm4553_vm1, %v4552_v36 }
 0x351   :  { %v279_v46 = vpop.f32.mrf.mxu1 }
 0x352   :  { %v360_v47 = vmul.f32 0.35355338, %v279_v46 }
 0x353   :  { %v4085_v48 = vpop.f32.mrf.mxu1 }
 0x354   :  { %v362_v49 = vsel %vm208_vm2, %v360_v47, -inf }
 0x355   :  { %363 = vmax.xlane.f32.xlu1 %v362_v49  ;;  %v356_v50 = vpop.f32.mrf.mxu1 }
 0x356   :  { %v361_v51 = vmul.f32 0.35355338, %v356_v50 }
 0x357   :  { %v4090_v52 = vpop.f32.mrf.mxu1 }
 0x358   :  { %v365_v53 = vsel %vm208_vm2, %v361_v51, -inf }
 0x359   :  { %366 = vmax.xlane.f32.xlu0 %v365_v53 }
 0x366   :  { %460 = vrot.lane.b32.xlu1 %v4694_v41, %s4555_s26 }
 0x36a   :  { %538 = vrot.lane.b32.xlu1 %v4696_v43, %s4556_s27 }
 0x36e   :  { %616 = vrot.lane.b32.xlu1 %v4694_v41, %s4556_s27 }
 0x3de   :  { %v364_v54 = vpop.xlane.xlu1 %363 }
 0x3df   :  { %v368_v55 = vsub.f32 %v360_v47, %v364_v54 }
 0x3e1   :  { %v370_v56 = vmul.f32 1.442695, %v368_v55 }
 0x3e2   :  { %v461_v57 = vpop.permute.xlu1 %460  ;;  %v367_v58 = vpop.xlane.xlu0 %366 }
 0x3e3   :  { %4370 = vpow2.f32 %v370_v56  ;;  %v369_v59 = vsub.f32 %v361_v51, %v367_v58 }
 0x3e5   :  { %v372_v60 = vmul.f32 1.442695, %v369_v59 }
 0x3e6   :  { %v539_v61 = vpop.permute.xlu1 %538 }
 0x3e7   :  { %4372 = vpow2.f32 %v372_v60  ;;  %4102 = vmatpush3.xpose.msk.msra.mxu0 %vm208_vm2, %v539_v61 }
 0x3e8   :  { %4111 = vmatprep.subr.mxu0 %v4552_v36 }
 0x3ea   :  { %v617_v2 = vpop.permute.xlu1 %616 }
 0x3f0   :  { %v4371_v62 = vpop.eup %4370 }
 0x3f1   :  { %v374_v63 = vsel %vm208_vm2, %v4371_v62, 0.0 }
 0x3f2   :  { %375 = vadd.xlane.f32.xlu0 %v374_v63 }
 0x3f4   :  { %v4373_v0 = vpop.eup %4372 }
 0x3f5   :  { %v377_v1 = vsel %vm208_vm2, %v4373_v0, 0.0 }
 0x3f6   :  { %378 = vadd.xlane.f32.xlu1 %v377_v1 }
 0x407   :  { %614 = vrot.lane.b32.xlu1 %v4694_v41, %s4557_s28 }
 0x408   :  { %384 = vrot.lane.b32.xlu0 %v4696_v43, %s4555_s26 }
 0x40c   :  { %536 = vrot.lane.b32.xlu0 %v4696_v43, %s4557_s28 }
 0x47b   :  { %v376_v3 = vpop.xlane.xlu0 %375 }
 0x47c   :  { %4374 = vrcp.f32 %v376_v3 }
 0x47f   :  { %v379_v4 = vpop.xlane.xlu1 %378  ;;  %v385_v5 = vpop.permute.xlu0 %384 }
 0x480   :  { %4376 = vrcp.f32 %v379_v4  ;;  %4092 = vmatpush3.msra.mxu1 %v385_v5 }
 0x481   :  { %4096 = vmatprep.subr.mxu1 %v4552_v36 }
 0x483   :  { %v537_v6 = vpop.permute.xlu0 %536  ;;  %v615_v11 = vpop.permute.xlu1 %614 }
 0x484   :  { %4104 = vmatmul.mubr.msk.f32.vlgmr.msra.gmra.mxu0 %vm208_vm2, %v537_v6 }
 0x485   :  { %4113 = vmatprep.mubr.msk.f32.mxu0 %vm4553_vm1, %v4552_v36 }
 0x489   :  { %v4375_v7 = vpop.eup %4374 }
 0x48a   :  { %v382_v8 = vmul.f32 %v4375_v7, %v4371_v62 }
 0x48c   :  { %4094 = vmatmul.mubr.msk.f32.vlgmr.msra.gmra.mxu1 %vm208_vm2, %v382_v8 }
 0x48d   :  { %v4377_v9 = vpop.eup %4376  ;;  %4097 = vmatpush3.msra.mxu1 %v461_v57  ;;  %4098 = vmatprep.mubr.msk.f32.mxu1 %vm4553_vm1, %v4552_v36 }
 0x48e   :  { %4106 = vmatprep.subr.mxu1 %v4552_v36  ;;  %v383_v10 = vmul.f32 %v4377_v9, %v4373_v0 }
 0x490   :  { %4099 = vmatmul.mubr.msk.f32.vlgmr.msra.gmra.mxu1 %vm208_vm2, %v383_v10 }
 0x491   :  { %4107 = vmatpush3.xpose.msk.msra.mxu1 %vm208_vm2, %v617_v2  ;;  %4108 = vmatprep.mubr.msk.f32.mxu1 %vm4553_vm1, %v4552_v36 }
 0x492   :  { %4116 = vmatprep.subr.mxu1 %v4552_v36 }
 0x494   :  { %4109 = vmatmul.mubr.msk.f32.vlgmr.msra.gmra.mxu1 %vm208_vm2, %v615_v11 }
 0x495   :  { %4118 = vmatprep.mubr.msk.f32.mxu1 %vm4553_vm1, %v4552_v36 }
 0x544   :  { %v610_v12 = vpop.f32.mrf.mxu0 }
 0x545   :  { %v692_v13 = vmul.f32 0.35355338, %v610_v12 }
 0x546   :  { %v4105_v14 = vpop.f32.mrf.mxu0 }
 0x547   :  { %v694_v15 = vsel %vm208_vm2, %v692_v13, -inf }
 0x548   :  { %695 = vmax.xlane.f32.xlu0 %v694_v15 }
 0x54c   :  { %v4749_v16 = vpop.f32.mrf.mxu1 }
 0x54e   :  { %v4095_v17 = vpop.f32.mrf.mxu1 }
 0x550   :  { %v4751_v18 = vpop.f32.mrf.mxu1 }
 0x552   :  { %v4100_v19 = vpop.f32.mrf.mxu1 }
 0x554   :  { %v688_v20 = vpop.f32.mrf.mxu1 }
 0x555   :  { %v693_v21 = vmul.f32 0.35355338, %v688_v20 }
 0x556   :  { %v4110_v22 = vpop.f32.mrf.mxu1 }
 0x557   :  { %v697_v23 = vsel %vm208_vm2, %v693_v21, -inf }
 0x558   :  { %698 = vmax.xlane.f32.xlu1 %v697_v23 }
 0x569   :  { %792 = vrot.lane.b32.xlu1 %v4694_v41, %s4558_s5 }
 0x56d   :  { %870 = vrot.lane.b32.xlu1 %v4696_v43, %s4559_s29 }
 0x571   :  { %948 = vrot.lane.b32.xlu1 %v4694_v41, %s4559_s29 }
 0x575   :  { %946 = vrot.lane.b32.xlu1 %v4694_v41, %s4560_s30 }
 0x5d1   :  { %v696_v24 = vpop.xlane.xlu0 %695 }
 0x5d2   :  { %v700_v25 = vsub.f32 %v692_v13, %v696_v24 }
 0x5d4   :  { %v702_v26 = vmul.f32 1.442695, %v700_v25 }
 0x5d6   :  { %4378 = vpow2.f32 %v702_v26 }
 0x5e1   :  { %v699_v27 = vpop.xlane.xlu1 %698 }
 0x5e2   :  { %v701_v32 = vsub.f32 %v693_v21, %v699_v27 }
 0x5e3   :  { %v4379_v28 = vpop.eup %4378 }
 0x5e4   :  { %v706_v29 = vsel %vm208_vm2, %v4379_v28, 0.0  ;;  %v704_v34 = vmul.f32 1.442695, %v701_v32 }
 0x5e5   :  { %707 = vadd.xlane.f32.xlu0 %v706_v29  ;;  %v793_v30 = vpop.permute.xlu1 %792 }
 0x5e6   :  { %4117 = vmatpush3.msra.mxu1 %v793_v30  ;;  %4380 = vpow2.f32 %v704_v34 }
 0x5e7   :  { %4126 = vmatprep.subr.mxu1 %v4552_v36 }
 0x5e9   :  { %v871_v47 = vpop.permute.xlu1 %870 }
 0x5ed   :  { %v949_v51 = vpop.permute.xlu1 %948 }
 0x5f1   :  { %v947_v53 = vpop.permute.xlu1 %946 }
 0x5f3   :  { %v4381_v39 = vpop.eup %4380 }
 0x5f4   :  { %v709_v40 = vsel %vm208_vm2, %v4381_v39, 0.0 }
 0x5fb   :  { %716 = vrot.lane.b32.xlu0 %v4696_v43, %s4558_s5 }
 0x61a   :  { %710 = vadd.xlane.f32.xlu0 %v709_v40 }
 0x630   :  { %868 = vrot.lane.b32.xlu0 %v4696_v43, %s4560_s30 }
 0x66e   :  { %v708_v42 = vpop.xlane.xlu0 %707 }
 0x66f   :  { %4382 = vrcp.f32 %v708_v42 }
 0x672   :  { %v717_v44 = vpop.permute.xlu0 %716 }
 0x673   :  { %4112 = vmatpush3.msra.mxu0 %v717_v44 }
 0x674   :  { %4121 = vmatprep.subr.mxu0 %v4552_v36 }
 0x67c   :  { %v4383_v45 = vpop.eup %4382 }
 0x67d   :  { %v714_v46 = vmul.f32 %v4383_v45, %v4379_v28 }
 0x67f   :  { %4114 = vmatmul.mubr.msk.f32.vlgmr.msra.gmra.mxu0 %vm208_vm2, %v714_v46 }
 0x680   :  { %4122 = vmatpush3.xpose.msk.msra.mxu0 %vm208_vm2, %v871_v47  ;;  %4123 = vmatprep.mubr.msk.f32.mxu0 %vm4553_vm1, %v4552_v36 }
 0x681   :  { %4131 = vmatprep.subr.mxu0 %v4552_v36 }
 0x6a3   :  { %v711_v48 = vpop.xlane.xlu0 %710 }
 0x6a4   :  { %4384 = vrcp.f32 %v711_v48 }
 0x6a7   :  { %v869_v49 = vpop.permute.xlu0 %868 }
 0x6a8   :  { %4124 = vmatmul.mubr.msk.f32.vlgmr.msra.gmra.mxu0 %vm208_vm2, %v869_v49 }
 0x6a9   :  { %4133 = vmatprep.mubr.msk.f32.mxu0 %vm4553_vm1, %v4552_v36 }
 0x6b1   :  { %v4385_v50 = vpop.eup %4384 }
 0x6b2   :  { %v715_v52 = vmul.f32 %v4385_v50, %v4381_v39 }
 0x6b4   :  { %4119 = vmatmul.mubr.msk.f32.vlgmr.msra.gmra.mxu1 %vm208_vm2, %v715_v52 }
 0x6b5   :  { %4127 = vmatpush3.xpose.msk.msra.mxu1 %vm208_vm2, %v949_v51  ;;  %4128 = vmatprep.mubr.msk.f32.mxu1 %vm4553_vm1, %v4552_v36 }
 0x6b6   :  { %4136 = vmatprep.subr.mxu1 %v4552_v36 }
 0x6b8   :  { %4129 = vmatmul.mubr.msk.f32.vlgmr.msra.gmra.mxu1 %vm208_vm2, %v947_v53 }
 0x6b9   :  { %4138 = vmatprep.mubr.msk.f32.mxu1 %vm4553_vm1, %v4552_v36 }
 0x73f   :  { %v4786_v54 = vpop.f32.mrf.mxu0 }
 0x741   :  { %v4115_v55 = vpop.f32.mrf.mxu0 }
 0x768   :  { %v942_v56 = vpop.f32.mrf.mxu0 }
 0x769   :  { %v1024_v57 = vmul.f32 0.35355338, %v942_v56 }
 0x76a   :  { %v4125_v58 = vpop.f32.mrf.mxu0 }
 0x76b   :  { %v1026_v59 = vsel %vm208_vm2, %v1024_v57, -inf }
 0x76c   :  { %1027 = vmax.xlane.f32.xlu0 %v1026_v59 }
 0x774   :  { %v4789_v60 = vpop.f32.mrf.mxu1 }
 0x776   :  { %v4120_v61 = vpop.f32.mrf.mxu1 }
 0x778   :  { %v1020_v62 = vpop.f32.mrf.mxu1 }
 0x779   :  { %v1025_v63 = vmul.f32 0.35355338, %v1020_v62 }
 0x77a   :  { %v4130_v0 = vpop.f32.mrf.mxu1 }
 0x77b   :  { %v1029_v1 = vsel %vm208_vm2, %v1025_v63, -inf  ;;  %v1565_v0 = vld [vmem:[%s5218_s4 + $0x8] sm:$0xff] }
 0x77c   :  { %1030 = vmax.xlane.f32.xlu1 %v1029_v1  ;;  %v1564_v1 = vld [vmem:[%s5218_s4] sm:$0xff] }
 0x78d   :  { %1124 = vrot.lane.b32.xlu1 %v4694_v41, %s4561_s12 }
 0x791   :  { %1202 = vrot.lane.b32.xlu1 %v4696_v43, %s4562_s0 }
 0x795   :  { %1280 = vrot.lane.b32.xlu1 %v4694_v41, %s4562_s0 }
 0x799   :  { %1278 = vrot.lane.b32.xlu1 %v4694_v41, %s4563_s8 }
 0x7f5   :  { %v1028_v2 = vpop.xlane.xlu0 %1027 }
 0x7f6   :  { %v1032_v3 = vsub.f32 %v1024_v57, %v1028_v2 }
 0x7f8   :  { %v1034_v4 = vmul.f32 1.442695, %v1032_v3 }
 0x7fa   :  { %4386 = vpow2.f32 %v1034_v4 }
 0x805   :  { %v1031_v5 = vpop.xlane.xlu1 %1030 }
 0x806   :  { %v1033_v9 = vsub.f32 %v1025_v63, %v1031_v5  ;;  %v1566_v63 = vld [vmem:[%s5218_s4 + $0x10] sm:$0xff] }
 0x807   :  { %v4387_v6 = vpop.eup %4386 }
 0x808   :  { %v1038_v7 = vsel %vm208_vm2, %v4387_v6, 0.0  ;;  %v1036_v10 = vmul.f32 1.442695, %v1033_v9 }
 0x809   :  { %1039 = vadd.xlane.f32.xlu0 %v1038_v7  ;;  %v1125_v8 = vpop.permute.xlu1 %1124 }
 0x80a   :  { %4137 = vmatpush3.msra.mxu1 %v1125_v8  ;;  %4388 = vpow2.f32 %v1036_v10 }
 0x80b   :  { %4146 = vmatprep.subr.mxu1 %v4552_v36 }
 0x80d   :  { %v1203_v19 = vpop.permute.xlu1 %1202 }
 0x811   :  { %v1281_v23 = vpop.permute.xlu1 %1280 }
 0x815   :  { %v1279_v25 = vpop.permute.xlu1 %1278 }
 0x817   :  { %v4389_v11 = vpop.eup %4388 }
 0x818   :  { %v1041_v12 = vsel %vm208_vm2, %v4389_v11, 0.0 }
 0x81f   :  { %1048 = vrot.lane.b32.xlu0 %v4696_v43, %s4561_s12 }
 0x83e   :  { %1042 = vadd.xlane.f32.xlu0 %v1041_v12 }
 0x854   :  { %1200 = vrot.lane.b32.xlu0 %v4696_v43, %s4563_s8 }
 0x892   :  { %v1040_v13 = vpop.xlane.xlu0 %1039 }
 0x893   :  { %4390 = vrcp.f32 %v1040_v13 }
 0x896   :  { %v1049_v14 = vpop.permute.xlu0 %1048 }
 0x897   :  { %4132 = vmatpush3.msra.mxu0 %v1049_v14 }
 0x898   :  { %4141 = vmatprep.subr.mxu0 %v4552_v36 }
 0x8a0   :  { %v4391_v15 = vpop.eup %4390 }
 0x8a1   :  { %v1046_v17 = vmul.f32 %v4391_v15, %v4387_v6 }
 0x8a3   :  { %4134 = vmatmul.mubr.msk.f32.vlgmr.msra.gmra.mxu0 %vm208_vm2, %v1046_v17 }
 0x8a4   :  { %4142 = vmatpush3.xpose.msk.msra.mxu0 %vm208_vm2, %v1203_v19  ;;  %4143 = vmatprep.mubr.msk.f32.mxu0 %vm4553_vm1, %v4552_v36 }
 0x8a5   :  { %4151 = vmatprep.subr.mxu0 %v4552_v36 }
 0x8c7   :  { %v1043_v20 = vpop.xlane.xlu0 %1042 }
 0x8c8   :  { %4392 = vrcp.f32 %v1043_v20 }
 0x8cb   :  { %v1201_v21 = vpop.permute.xlu0 %1200 }
 0x8cc   :  { %4144 = vmatmul.mubr.msk.f32.vlgmr.msra.gmra.mxu0 %vm208_vm2, %v1201_v21 }
 0x8cd   :  { %4153 = vmatprep.mubr.msk.f32.mxu0 %vm4553_vm1, %v4552_v36 }
 0x8d5   :  { %v4393_v22 = vpop.eup %4392 }
 0x8d6   :  { %v1047_v24 = vmul.f32 %v4393_v22, %v4389_v11 }
 0x8d8   :  { %4139 = vmatmul.mubr.msk.f32.vlgmr.msra.gmra.mxu1 %vm208_vm2, %v1047_v24 }
 0x8d9   :  { %4147 = vmatpush3.xpose.msk.msra.mxu1 %vm208_vm2, %v1281_v23  ;;  %4148 = vmatprep.mubr.msk.f32.mxu1 %vm4553_vm1, %v4552_v36 }
 0x8da   :  { %4156 = vmatprep.subr.mxu1 %v4552_v36 }
 0x8dc   :  { %4149 = vmatmul.mubr.msk.f32.vlgmr.msra.gmra.mxu1 %vm208_vm2, %v1279_v25 }
 0x8dd   :  { %4158 = vmatprep.mubr.msk.f32.mxu1 %vm4553_vm1, %v4552_v36 }
 0x963   :  { %v1120_v26 = vpop.f32.mrf.mxu0 }
 0x965   :  { %v4135_v27 = vpop.f32.mrf.mxu0 }
 0x98c   :  { %v1274_v28 = vpop.f32.mrf.mxu0 }
 0x98d   :  { %v1356_v29 = vmul.f32 0.35355338, %v1274_v28 }
 0x98e   :  { %v4145_v30 = vpop.f32.mrf.mxu0 }
 0x98f   :  { %v1358_v32 = vsel %vm208_vm2, %v1356_v29, -inf }
 0x990   :  { %1359 = vmax.xlane.f32.xlu0 %v1358_v32 }
 0x998   :  { %v1196_v34 = vpop.f32.mrf.mxu1 }
 0x99a   :  { %v4140_v39 = vpop.f32.mrf.mxu1 }
 0x99c   :  { %v1352_v40 = vpop.f32.mrf.mxu1 }
 0x99d   :  { %v1357_v42 = vmul.f32 0.35355338, %v1352_v40 }
 0x99e   :  { %v4150_v44 = vpop.f32.mrf.mxu1 }
 0x99f   :  { %v1361_v45 = vsel %vm208_vm2, %v1357_v42, -inf }
 0x9a0   :  { %1362 = vmax.xlane.f32.xlu1 %v1361_v45  ;;  %v1696_v45 = vld [vmem:[#allocation2 + $0x18] sm:$0xff] }
 0x9b1   :  { %1456 = vrot.lane.b32.xlu1 %v4694_v41, %s4564_s13 }
 0x9b5   :  { %1534 = vrot.lane.b32.xlu1 %v4786_v54, %s4550_s21 }
 0x9b9   :  { %1536 = vrot.lane.b32.xlu1 %v4789_v60, %s4550_s21 }
 0x9bd   :  { %1544 = vrot.lane.b32.xlu1 %v1196_v34, %s4565_s14 }
 0xa19   :  { %v1360_v46 = vpop.xlane.xlu0 %1359 }
 0xa1a   :  { %v1364_v47 = vsub.f32 %v1356_v29, %v1360_v46  ;;  %v1694_v46 = vld [vmem:[#allocation2 + $0x8] sm:$0xff] }
 0xa1c   :  { %v1366_v48 = vmul.f32 1.442695, %v1364_v47  ;;  %v1693_v47 = vld [vmem:[#allocation2] sm:$0xff] }
 0xa1e   :  { %4394 = vpow2.f32 %v1366_v48 }
 0xa29   :  { %v1363_v49 = vpop.xlane.xlu1 %1362 }
 0xa2a   :  { %v1365_v50 = vsub.f32 %v1357_v42, %v1363_v49 }
 0xa2b   :  { %v4395_v51 = vpop.eup %4394 }
 0xa2c   :  { %v1368_v52 = vmul.f32 1.442695, %v1365_v50  ;;  %v1370_v53 = vsel %vm208_vm2, %v4395_v51, 0.0 }
 0xa2d   :  { %1371 = vadd.xlane.f32.xlu0 %v1370_v53  ;;  %v1457_v41 = vpop.permute.xlu1 %1456 }
 0xa2e   :  { %4396 = vpow2.f32 %v1368_v52  ;;  %4157 = vmatpush3.msra.mxu1 %v1457_v41  ;;  %v1683_v41 = vsub.s32 2, %v4677_v35 }
 0xa2f   :  { %4172 = vmatprep.subr.mxu1 %v1696_v45 }
 0xa31   :  { %v1535_v6 = vpop.permute.xlu1 %1534 }
 0xa32   :  { %v1556_v8 = vsel %vm208_vm2, %v4749_v16, %v1535_v6  ;;  %v1570_v16 = vsub.s32 1, %v4677_v35  ;;  %v1793_v6 = vld [vmem:[%s5220_s6 + $0x8] sm:$0xff] }
 0xa34   :  { %v1571_v20 = vrot.slane %v4689_v38, %v1570_v16 }
 0xa35   :  { %v1537_v11 = vpop.permute.xlu1 %1536 }
 0xa36   :  { %v1557_v14 = vsel %vm208_vm2, %v4751_v18, %v1537_v11 }
 0xa39   :  { %v1545_v13 = vpop.permute.xlu1 %1544 }
 0xa3a   :  { %v1560_v15 = vsel %vm1558_vm4, %v1557_v14, %v1545_v13 }
 0xa3b   :  { %v4397_v54 = vpop.eup %4396 }
 0xa3c   :  { %v1373_v55 = vsel %vm208_vm2, %v4397_v54, 0.0 }
 0xa3d   :  { %1374 = vadd.xlane.f32.xlu0 %v1373_v55  ;;  %v1684_v55 = vrot.slane %v4689_v38, %v1683_v41 }
 0xa53   :  { %1380 = vrot.lane.b32.xlu0 %v4696_v43, %s4564_s13  ;;  %v1567_v43 = vld [vmem:[%s5218_s4 + $0x18] sm:$0xff] }
 0xa57   :  { %1542 = vrot.lane.b32.xlu0 %v1120_v26, %s4565_s14 }
 0xab6   :  { %v1372_v56 = vpop.xlane.xlu0 %1371 }
 0xab7   :  { %4398 = vrcp.f32 %v1372_v56 }
 0xac4   :  { %v4399_v58 = vpop.eup %4398 }
 0xac5   :  { %v1378_v60 = vmul.f32 %v4399_v58, %v4395_v51 }
 0xac6   :  { %v1375_v57 = vpop.xlane.xlu0 %1374 }
 0xac7   :  { %4400 = vrcp.f32 %v1375_v57 }
 0xaca   :  { %v1381_v59 = vpop.permute.xlu0 %1380 }
 0xacb   :  { %4152 = vmatpush3.msra.mxu0 %v1381_v59 }
 0xacc   :  { %4154 = vmatmul.mubr.msk.f32.vlgmr.msra.gmra.mxu0 %vm208_vm2, %v1378_v60  ;;  %4161 = vmatprep.subr.mxu0 %v1567_v43 }
 0xacd   :  { %4162 = vmatpush3.msra.mxu0 %v1567_v43 }
 0xace   :  { %4163 = vmatprep.subr.mxu0 %v1566_v63  ;;  %v1543_v7 = vpop.permute.xlu0 %1542 }
 0xacf   :  { %4164 = vmatpush3.msra.mxu0 %v1566_v63  ;;  %v1559_v9 = vsel %vm1558_vm4, %v1556_v8, %v1543_v7  ;;  %v1792_v7 = vld [vmem:[%s5220_s6] sm:$0xff]  ;;  %v1699_v8 = vsub.s32 4, %v4677_v35 }
 0xad0   :  { %4165 = vmatprep.subr.mxu0 %v1565_v0 }
 0xad1   :  { %4166 = vmatpush3.msra.mxu0 %v1565_v0  ;;  %v1799_v0 = vld [vmem:[%s5220_s6 + $0x38] sm:$0xff] }
 0xad2   :  { %4167 = vmatprep.subr.mxu0 %v1564_v1 }
 0xad3   :  { %4168 = vmatpush3.msra.mxu0 %v1564_v1  ;;  %v1798_v1 = vld [vmem:[%s5220_s6 + $0x30] sm:$0xff] }
 0xad4   :  { %v4401_v61 = vpop.eup %4400  ;;  %4183 = vmatprep.subr.mxu0 %v1799_v0 }
 0xad5   :  { %v1379_v62 = vmul.f32 %v4401_v61, %v4397_v54  ;;  %v1689_v54 = vsub.s32 3, %v4677_v35 }
 0xad7   :  { %4159 = vmatmul.mubr.msk.f32.vlgmr.msra.gmra.mxu1 %vm208_vm2, %v1379_v62  ;;  %v1690_v58 = vrot.slane %v4689_v38, %v1689_v54 }
 0xad8   :  { %4173 = vmatpush3.msra.mxu1 %v1696_v45 }
 0xb8c   :  { %v1452_v2 = vpop.f32.mrf.mxu0 }
 0xb8d   :  { %1550 = vrot.lane.b32.xlu0 %v1452_v2, %s4566_s1  ;;  %v1797_v2 = vld [vmem:[%s5220_s6 + $0x28] sm:$0xff] }
 0xb8e   :  { %v4155_v3 = vpop.f32.mrf.mxu0 }
 0xb8f   :  { %v1796_v3 = vld [vmem:[%s5220_s6 + $0x20] sm:$0xff] }
 0xb97   :  { %v1528_v4 = vpop.f32.mrf.mxu1 }
 0xb98   :  { %1552 = vrot.lane.b32.xlu1 %v1528_v4, %s4566_s1  ;;  %v1795_v4 = vld [vmem:[%s5220_s6 + $0x18] sm:$0xff] }
 0xb99   :  { %v4160_v5 = vpop.f32.mrf.mxu1 }
 0xb9a   :  { %v1794_v5 = vld [vmem:[%s5220_s6 + $0x10] sm:$0xff] }
 0xbff   :  { %v1551_v10 = vpop.permute.xlu0 %1550 }
 0xc00   :  { %v1562_v12 = vsel %vm1561_vm3, %v1559_v9, %v1551_v10  ;;  %v1700_v9 = vrot.slane %v4689_v38, %v1699_v8 }
 0xc01   :  { %4169 = vmatprep.mubr.msk.f32.mxu0 %vm71_vm0, %v1562_v12 }
 0xc0a   :  { %v1553_v17 = vpop.permute.xlu1 %1552 }
 0xc0b   :  { %v1563_v19 = vsel %vm1561_vm3, %v1560_v15, %v1553_v17 }
 0xc0c   :  { %4170 = vmatmul.mubr.msk.f32.vlgmr.msra.gmra.mxu0 %vm71_vm0, %v1563_v19 }
 0xc0d   :  { %4184 = vmatpush3.msra.mxu0 %v1799_v0  ;;  %v1922_v0 = vsub.s32 7, %v4677_v35 }
 0xc0e   :  { %4185 = vmatprep.subr.mxu0 %v1798_v1 }
 0xc0f   :  { %4186 = vmatpush3.msra.mxu0 %v1798_v1 }
 0xc10   :  { %4187 = vmatprep.subr.mxu0 %v1797_v2 }
 0xc11   :  { %4188 = vmatpush3.msra.mxu0 %v1797_v2 }
 0xc12   :  { %4189 = vmatprep.subr.mxu0 %v1796_v3 }
 0xc13   :  { %4190 = vmatpush3.msra.mxu0 %v1796_v3 }
 0xc14   :  { %4191 = vmatprep.subr.mxu0 %v1795_v4 }
 0xc15   :  { %4192 = vmatpush3.msra.mxu0 %v1795_v4 }
 0xc16   :  { %4193 = vmatprep.subr.mxu0 %v1794_v5 }
 0xc17   :  { %4194 = vmatpush3.msra.mxu0 %v1794_v5  ;;  %v1923_v5 = vrot.slane %v4689_v38, %v1922_v0 }
 0xc18   :  { %4195 = vmatprep.subr.mxu0 %v1793_v6 }
 0xc19   :  { %4196 = vmatpush3.msra.mxu0 %v1793_v6 }
 0xc1a   :  { %4197 = vmatprep.subr.mxu0 %v1792_v7 }
 0xc1b   :  { %4198 = vmatpush3.msra.mxu0 %v1792_v7 }
 0xc1c   :  { %4223 = vmatprep.subr.mxu0 %v4552_v36 }
 0xccc   :  { %v4171_v21 = vpop.f32.mrf.mxu0 }
 0xccd   :  { %v1650_v22 = vadd.f32 %v4171_v21, %v1571_v20 }
 0xcce   :  { %v1644_v23 = vpop.f32.mrf.mxu0 }
 0xccf   :  { %v1645_v24 = vadd.f32 %v1644_v23, %v1571_v20  ;;  %v1654_v25 = vadd.f32 %v1650_v22, %v4673_v33 }
 0xcd1   :  { %v1658_v18 = vsel %vm71_vm0, %v1654_v25, 0.0  ;;  %v1653_v26 = vadd.f32 %v1645_v24, %v4669_v31  ;;  %v1695_v31 = vld [vmem:[#allocation2 + $0x10] sm:$0xff] }
 0xcd2   :  { %1659 = vadd.xlane.f32.xlu1 %v1658_v18  ;;  %4174 = vmatprep.subr.mxu1 %v1695_v31  ;;  %v1802_v18 = vsub.s32 5, %v4677_v35 }
 0xcd3   :  { %v1655_v27 = vsel %vm71_vm0, %v1653_v26, 0.0  ;;  %4175 = vmatpush3.msra.mxu1 %v1695_v31 }
 0xcd4   :  { %1656 = vadd.xlane.f32.xlu0 %v1655_v27  ;;  %4176 = vmatprep.subr.mxu1 %v1694_v46 }
 0xcd5   :  { %4177 = vmatpush3.msra.mxu1 %v1694_v46 }
 0xcd6   :  { %4178 = vmatprep.subr.mxu1 %v1693_v47 }
 0xcd7   :  { %4179 = vmatpush3.msra.mxu1 %v1693_v47 }
 0xd5b   :  { %v1660_v28 = vpop.xlane.xlu1 %1659 }
 0xd5c   :  { %v1662_v29 = vmul.f32 0.03125, %v1660_v28 }
 0xd5d   :  { %v1657_v30 = vpop.xlane.xlu0 %1656 }
 0xd5e   :  { %v1661_v32 = vmul.f32 0.03125, %v1657_v30  ;;  %v1664_v34 = vsub.f32 %v1654_v25, %v1662_v29 }
 0xd60   :  { %v1663_v39 = vsub.f32 %v1653_v26, %v1661_v32  ;;  %v1666_v44 = vmul.f32 %v1664_v34, %v1664_v34  ;;  %v1803_v26 = vrot.slane %v4689_v38, %v1802_v18 }
 0xd62   :  { %v1665_v40 = vmul.f32 %v1663_v39, %v1663_v39  ;;  %v1670_v33 = vsel %vm71_vm0, %v1666_v44, 0.0 }
 0xd64   :  { %v1667_v42 = vsel %vm71_vm0, %v1665_v40, 0.0 }
 0xd65   :  { %1668 = vadd.xlane.f32.xlu0 %v1667_v42 }
 0xd69   :  { %1671 = vadd.xlane.f32.xlu0 %v1670_v33 }
 0xdee   :  { %v1669_v48 = vpop.xlane.xlu0 %1668 }
 0xdef   :  { %v1673_v49 = vmul.f32 0.03125, %v1669_v48 }
 0xdf1   :  { %v1675_v50 = vadd.f32 1e-12, %v1673_v49 }
 0xdf2   :  { %v1672_v51 = vpop.xlane.xlu0 %1671 }
 0xdf3   :  { %4402 = vrsqrt.f32 %v1675_v50  ;;  %v1674_v52 = vmul.f32 0.03125, %v1672_v51  ;;  %v3898_v51 = vld [vmem:[%s5217_s3 + $0x38] sm:$0xff] }
 0xdf4   :  { %4202 = vmatprep.subr.mxu1 %v3898_v51 }
 0xdf5   :  { %v1676_v53 = vadd.f32 1e-12, %v1674_v52  ;;  %v3897_v52 = vld [vmem:[%s5217_s3 + $0x30] sm:$0xff] }
 0xdf7   :  { %4404 = vrsqrt.f32 %v1676_v53  ;;  %v3896_v53 = vld [vmem:[%s5217_s3 + $0x28] sm:$0xff] }
 0xe00   :  { %v4403_v56 = vpop.eup %4402 }
 0xe01   :  { %v1679_v57 = vmul.f32 %v4403_v56, %v1663_v39 }
 0xe03   :  { %v1685_v59 = vmul.f32 %v1684_v55, %v1679_v57 }
 0xe04   :  { %v4405_v60 = vpop.eup %4404 }
 0xe05   :  { %v1680_v61 = vmul.f32 %v4405_v60, %v1664_v34  ;;  %v1691_v62 = vadd.f32 %v1690_v58, %v1685_v59 }
 0xe07   :  { %v1686_v43 = vmul.f32 %v1684_v55, %v1680_v61  ;;  %4180 = vmatprep.mubr.msk.f32.mxu1 %vm71_vm0, %v1691_v62  ;;  %v3895_v55 = vld [vmem:[%s5217_s3 + $0x20] sm:$0xff] }
 0xe09   :  { %v1692_v63 = vadd.f32 %v1690_v58, %v1686_v43 }
 0xe0b   :  { %4181 = vmatmul.mubr.msk.f32.vlgmr.msra.gmra.mxu1 %vm71_vm0, %v1692_v63 }
 0xe0c   :  { %4203 = vmatpush3.msra.mxu1 %v3898_v51 }
 0xe0d   :  { %4204 = vmatprep.subr.mxu1 %v3897_v52 }
 0xe0e   :  { %4205 = vmatpush3.msra.mxu1 %v3897_v52 }
 0xe0f   :  { %4206 = vmatprep.subr.mxu1 %v3896_v53 }
 0xe10   :  { %4207 = vmatpush3.msra.mxu1 %v3896_v53 }
 0xe11   :  { %4208 = vmatprep.subr.mxu1 %v3895_v55 }
 0xe12   :  { %4209 = vmatpush3.msra.mxu1 %v3895_v55 }
 0xe13   :  { %4213 = vmatprep.subr.mxu1 %v4552_v36 }
 0xecb   :  { %v4182_v10 = vpop.f32.mrf.mxu1 }
 0xecc   :  { %v1779_v11 = vadd.f32 %v4182_v10, %v1700_v9  ;;  %v4959_v10 = vld [vmem:[%s5221_s7 + $0x8] sm:$0xff] }
 0xecd   :  { %v1773_v12 = vpop.f32.mrf.mxu1 }
 0xece   :  { %v1785_v13 = vmul.f32 0.70710677, %v1779_v11  ;;  %v1774_v14 = vadd.f32 %v1773_v12, %v1700_v9  ;;  %v1783_v23 = vmul.f32 0.5, %v1779_v11 }
 0xed0   :  { %4406 = verf.f32 %v1785_v13  ;;  %v1784_v15 = vmul.f32 0.70710677, %v1774_v14  ;;  %v1782_v21 = vmul.f32 0.5, %v1774_v14 }
 0xed2   :  { %4408 = verf.f32 %v1784_v15 }
 0xedd   :  { %v4407_v17 = vpop.eup %4406 }
 0xede   :  { %v1789_v20 = vadd.f32 1.0, %v4407_v17 }
 0xedf   :  { %v4409_v19 = vpop.eup %4408 }
 0xee0   :  { %v1788_v22 = vadd.f32 1.0, %v4409_v19  ;;  %v1791_v25 = vmul.f32 %v1789_v20, %v1783_v23 }
 0xee2   :  { %v1790_v24 = vmul.f32 %v1788_v22, %v1782_v21 }
 0xee4   :  { %4199 = vmatprep.mubr.msk.f32.mxu0 %vm1804_vm5, %v1790_v24 }
 0xee5   :  { %4200 = vmatmul.mubr.msk.f32.vlgmr.msra.gmra.mxu0 %vm1804_vm5, %v1791_v25 }
 0xee6   :  { %4225 = vmatprep.mubr.msk.f32.mxu0 %vm4553_vm1, %v4552_v36 }
 0xfa5   :  { %v4201_v27 = vpop.f32.mrf.mxu0 }
 0xfa6   :  { %v1883_v28 = vadd.f32 %v4201_v27, %v1803_v26 }
 0xfa7   :  { %v1877_v29 = vpop.f32.mrf.mxu0 }
 0xfa8   :  { %v1878_v30 = vadd.f32 %v1877_v29, %v1803_v26  ;;  %v1887_v32 = vadd.f32 %v1883_v28, %v1692_v63 }
 0xfaa   :  { %v1891_v34 = vsel %vm71_vm0, %v1887_v32, 0.0  ;;  %v1886_v39 = vadd.f32 %v1878_v30, %v1691_v62  ;;  %v1916_v62 = vsub.s32 6, %v4677_v35 }
 0xfab   :  { %1892 = vadd.xlane.f32.xlu1 %v1891_v34 }
 0xfac   :  { %v1888_v40 = vsel %vm71_vm0, %v1886_v39, 0.0  ;;  %v1917_v63 = vrot.slane %v4689_v38, %v1916_v62  ;;  %v1936_v38 = vrot.slane %v4959_v10, %v122_v37 }
 0xfad   :  { %1889 = vadd.xlane.f32.xlu0 %v1888_v40 }
0x1034   :  { %v1893_v42 = vpop.xlane.xlu1 %1892 }
0x1035   :  { %v1895_v44 = vmul.f32 0.03125, %v1893_v42 }
0x1036   :  { %v1890_v33 = vpop.xlane.xlu0 %1889 }
0x1037   :  { %v1897_v45 = vsub.f32 %v1887_v32, %v1895_v44  ;;  %v1894_v31 = vmul.f32 0.03125, %v1890_v33 }
0x1039   :  { %v1896_v46 = vsub.f32 %v1886_v39, %v1894_v31  ;;  %v1899_v47 = vmul.f32 %v1897_v45, %v1897_v45 }
0x103b   :  { %v1903_v48 = vsel %vm71_vm0, %v1899_v47, 0.0  ;;  %v1898_v49 = vmul.f32 %v1896_v46, %v1896_v46 }
0x103c   :  { %1904 = vadd.xlane.f32.xlu1 %v1903_v48 }
0x103d   :  { %v1900_v50 = vsel %vm71_vm0, %v1898_v49, 0.0 }
0x103e   :  { %1901 = vadd.xlane.f32.xlu0 %v1900_v50 }
0x10c5   :  { %v1905_v56 = vpop.xlane.xlu1 %1904 }
0x10c6   :  { %v1907_v57 = vmul.f32 0.03125, %v1905_v56 }
0x10c7   :  { %v1902_v58 = vpop.xlane.xlu0 %1901 }
0x10c8   :  { %v1909_v59 = vadd.f32 1e-12, %v1907_v57  ;;  %v1906_v60 = vmul.f32 0.03125, %v1902_v58 }
0x10ca   :  { %4410 = vrsqrt.f32 %v1909_v59  ;;  %v1908_v61 = vadd.f32 1e-12, %v1906_v60 }
0x10cc   :  { %4412 = vrsqrt.f32 %v1908_v61 }
0x10d7   :  { %v4411_v43 = vpop.eup %4410 }
0x10d8   :  { %v1913_v1 = vmul.f32 %v4411_v43, %v1897_v45 }
0x10d9   :  { %v4413_v2 = vpop.eup %4412 }
0x10da   :  { %v1912_v3 = vmul.f32 %v4413_v2, %v1896_v46  ;;  %v1919_v4 = vmul.f32 %v1917_v63, %v1913_v1 }
0x10dc   :  { %v1918_v6 = vmul.f32 %v1917_v63, %v1912_v3  ;;  %v4948_v9 = vadd.f32 %v1923_v5, %v1919_v4 }
0x10de   :  { %v4946_v7 = vadd.f32 %v1923_v5, %v1918_v6 }
0x10e0   :  { %4210 = vmatprep.mubr.msk.f32.mxu1 %vm71_vm0, %v4946_v7 }
0x10e1   :  { %4211 = vmatmul.mubr.msk.f32.vlgmr.msra.gmra.mxu1 %vm71_vm0, %v4948_v9 }
0x10e2   :  { %4215 = vmatprep.mubr.msk.f32.mxu1 %vm4553_vm1, %v4552_v36 }
0x11a1   :  { %v4212_v11 = vpop.f32.mrf.mxu1 }
0x11a2   :  { %v4964_v12 = vadd.f32 %v4212_v11, %v1936_v38 }
0x11a3   :  { %v2009_v13 = vpop.f32.mrf.mxu1 }
0x11a4   :  { %v4966_v14 = vadd.f32 %v2009_v13, %v1936_v38  ;;  %2096 = vrot.lane.b32.xlu1 %v4964_v12, %s4554_s25 }
0x11a6   :  { %2019 = vrot.lane.b32.xlu0 %v4966_v14, %s4554_s25 }
0x1216   :  { %v2097_v17 = vpop.permute.xlu1 %2096 }
0x1218   :  { %v2020_v15 = vpop.permute.xlu0 %2019 }
0x1219   :  { %4214 = vmatpush3.xpose.msk.msra.mxu1 %vm208_vm2, %v2020_v15 }
0x121a   :  { %4218 = vmatprep.subr.mxu1 %v4552_v36 }
0x121c   :  { %4216 = vmatmul.mubr.msk.f32.vlgmr.msra.gmra.mxu1 %vm208_vm2, %v4966_v14 }
0x121d   :  { %4219 = vmatpush3.xpose.msk.msra.mxu1 %vm208_vm2, %v2097_v17  ;;  %4220 = vmatprep.mubr.msk.f32.mxu1 %vm4553_vm1, %v4552_v36 }
0x121e   :  { %4228 = vmatprep.subr.mxu1 %v4552_v36 }
0x1220   :  { %4221 = vmatmul.mubr.msk.f32.vlgmr.msra.gmra.mxu1 %vm208_vm2, %v4964_v12 }
0x1221   :  { %4230 = vmatprep.mubr.msk.f32.mxu1 %vm4553_vm1, %v4552_v36 }
0x12dc   :  { %v2091_v37 = vpop.f32.mrf.mxu1 }
0x12dd   :  { %v2172_v19 = vmul.f32 0.35355338, %v2091_v37 }
0x12de   :  { %v4217_v20 = vpop.f32.mrf.mxu1 }
0x12df   :  { %v2174_v21 = vsel %vm208_vm2, %v2172_v19, -inf }
0x12e0   :  { %2175 = vmax.xlane.f32.xlu1 %v2174_v21  ;;  %v2168_v22 = vpop.f32.mrf.mxu1 }
0x12e1   :  { %v2173_v23 = vmul.f32 0.35355338, %v2168_v22 }
0x12e2   :  { %v4222_v24 = vpop.f32.mrf.mxu1 }
0x12e3   :  { %v2177_v25 = vsel %vm208_vm2, %v2173_v23, -inf }
0x12e4   :  { %2178 = vmax.xlane.f32.xlu0 %v2177_v25 }
0x12f1   :  { %2272 = vrot.lane.b32.xlu1 %v4964_v12, %s4555_s26 }
0x12f5   :  { %2350 = vrot.lane.b32.xlu1 %v4966_v14, %s4556_s27 }
0x12f9   :  { %2428 = vrot.lane.b32.xlu1 %v4964_v12, %s4556_s27 }
0x1369   :  { %v2176_v26 = vpop.xlane.xlu1 %2175 }
0x136a   :  { %v2180_v27 = vsub.f32 %v2172_v19, %v2176_v26 }
0x136c   :  { %v2182_v28 = vmul.f32 1.442695, %v2180_v27 }
0x136d   :  { %v2273_v29 = vpop.permute.xlu1 %2272  ;;  %v2179_v30 = vpop.xlane.xlu0 %2178 }
0x136e   :  { %4414 = vpow2.f32 %v2182_v28  ;;  %v2181_v32 = vsub.f32 %v2173_v23, %v2179_v30  ;;  %4229 = vmatpush3.msra.mxu1 %v2273_v29 }
0x136f   :  { %4238 = vmatprep.subr.mxu1 %v4552_v36 }
0x1370   :  { %v2184_v34 = vmul.f32 1.442695, %v2181_v32 }
0x1371   :  { %v2351_v33 = vpop.permute.xlu1 %2350 }
0x1372   :  { %4416 = vpow2.f32 %v2184_v34 }
0x1375   :  { %v2429_v45 = vpop.permute.xlu1 %2428 }
0x137b   :  { %v4415_v39 = vpop.eup %4414 }
0x137c   :  { %v2186_v40 = vsel %vm208_vm2, %v4415_v39, 0.0 }
0x137d   :  { %2187 = vadd.xlane.f32.xlu0 %v2186_v40 }
0x137f   :  { %v4417_v42 = vpop.eup %4416 }
0x1380   :  { %v2189_v44 = vsel %vm208_vm2, %v4417_v42, 0.0 }
0x1381   :  { %2190 = vadd.xlane.f32.xlu1 %v2189_v44 }
0x1392   :  { %2426 = vrot.lane.b32.xlu1 %v4964_v12, %s4557_s28 }
0x1393   :  { %2196 = vrot.lane.b32.xlu0 %v4966_v14, %s4555_s26 }
0x1397   :  { %2348 = vrot.lane.b32.xlu0 %v4966_v14, %s4557_s28 }
0x1406   :  { %v2188_v31 = vpop.xlane.xlu0 %2187 }
0x1407   :  { %4418 = vrcp.f32 %v2188_v31 }
0x140a   :  { %v2191_v46 = vpop.xlane.xlu1 %2190  ;;  %v2197_v47 = vpop.permute.xlu0 %2196 }
0x140b   :  { %4420 = vrcp.f32 %v2191_v46  ;;  %4224 = vmatpush3.msra.mxu0 %v2197_v47 }
0x140c   :  { %4233 = vmatprep.subr.mxu0 %v4552_v36 }
0x140e   :  { %v2349_v52 = vpop.permute.xlu0 %2348  ;;  %v2427_v53 = vpop.permute.xlu1 %2426 }
0x1414   :  { %v4419_v48 = vpop.eup %4418 }
0x1415   :  { %v2194_v49 = vmul.f32 %v4419_v48, %v4415_v39 }
0x1417   :  { %4226 = vmatmul.mubr.msk.f32.vlgmr.msra.gmra.mxu0 %vm208_vm2, %v2194_v49 }
0x1418   :  { %v4421_v50 = vpop.eup %4420  ;;  %4234 = vmatpush3.xpose.msk.msra.mxu0 %vm208_vm2, %v2351_v33  ;;  %4235 = vmatprep.mubr.msk.f32.mxu0 %vm4553_vm1, %v4552_v36 }
0x1419   :  { %v2195_v51 = vmul.f32 %v4421_v50, %v4417_v42  ;;  %4243 = vmatprep.subr.mxu0 %v4552_v36 }
0x141b   :  { %4231 = vmatmul.mubr.msk.f32.vlgmr.msra.gmra.mxu1 %vm208_vm2, %v2195_v51  ;;  %4236 = vmatmul.mubr.msk.f32.vlgmr.msra.gmra.mxu0 %vm208_vm2, %v2349_v52 }
0x141c   :  { %4239 = vmatpush3.xpose.msk.msra.mxu1 %vm208_vm2, %v2429_v45  ;;  %4240 = vmatprep.mubr.msk.f32.mxu1 %vm4553_vm1, %v4552_v36 }
0x141d   :  { %4248 = vmatprep.subr.mxu1 %v4552_v36  ;;  %4245 = vmatprep.mubr.msk.f32.mxu0 %vm4553_vm1, %v4552_v36 }
0x141f   :  { %4241 = vmatmul.mubr.msk.f32.vlgmr.msra.gmra.mxu1 %vm208_vm2, %v2427_v53 }
0x1420   :  { %4250 = vmatprep.mubr.msk.f32.mxu1 %vm4553_vm1, %v4552_v36 }
0x14d7   :  { %v5018_v55 = vpop.f32.mrf.mxu0 }
0x14d9   :  { %v4227_v56 = vpop.f32.mrf.mxu0 }
0x14db   :  { %v5020_v57 = vpop.f32.mrf.mxu1  ;;  %v2422_v58 = vpop.f32.mrf.mxu0 }
0x14dc   :  { %v2504_v59 = vmul.f32 0.35355338, %v2422_v58 }
0x14dd   :  { %v4232_v60 = vpop.f32.mrf.mxu1  ;;  %v4237_v61 = vpop.f32.mrf.mxu0 }
0x14de   :  { %v2506_v43 = vsel %vm208_vm2, %v2504_v59, -inf }
0x14df   :  { %2507 = vmax.xlane.f32.xlu0 %v2506_v43  ;;  %v2500_v63 = vpop.f32.mrf.mxu1 }
0x14e0   :  { %v2505_v1 = vmul.f32 0.35355338, %v2500_v63 }
0x14e1   :  { %v4242_v2 = vpop.f32.mrf.mxu1 }
0x14e2   :  { %v2509_v3 = vsel %vm208_vm2, %v2505_v1, -inf }
0x14e3   :  { %2510 = vmax.xlane.f32.xlu1 %v2509_v3 }
0x14f4   :  { %2604 = vrot.lane.b32.xlu1 %v4964_v12, %s4558_s5 }
0x14f5   :  { %2528 = vrot.lane.b32.xlu0 %v4966_v14, %s4558_s5 }
0x14f8   :  { %2682 = vrot.lane.b32.xlu1 %v4966_v14, %s4559_s29 }
0x14fc   :  { %2760 = vrot.lane.b32.xlu1 %v4964_v12, %s4559_s29 }
0x1500   :  { %2758 = vrot.lane.b32.xlu1 %v4964_v12, %s4560_s30 }
0x1568   :  { %v2508_v4 = vpop.xlane.xlu0 %2507 }
0x1569   :  { %v2512_v5 = vsub.f32 %v2504_v59, %v2508_v4 }
0x156b   :  { %v2514_v6 = vmul.f32 1.442695, %v2512_v5 }
0x156c   :  { %v2529_v38 = vpop.permute.xlu0 %2528  ;;  %v2511_v11 = vpop.xlane.xlu1 %2510 }
0x156d   :  { %4422 = vpow2.f32 %v2514_v6  ;;  %v2513_v13 = vsub.f32 %v2505_v1, %v2511_v11  ;;  %4244 = vmatpush3.msra.mxu0 %v2529_v38 }
0x156e   :  { %4253 = vmatprep.subr.mxu0 %v4552_v36 }
0x156f   :  { %v2516_v15 = vmul.f32 1.442695, %v2513_v13 }
0x1570   :  { %v2605_v17 = vpop.permute.xlu1 %2604 }
0x1571   :  { %4424 = vpow2.f32 %v2516_v15  ;;  %4249 = vmatpush3.msra.mxu1 %v2605_v17 }
0x1572   :  { %4258 = vmatprep.subr.mxu1 %v4552_v36 }
0x1574   :  { %v2683_v24 = vpop.permute.xlu1 %2682 }
0x1578   :  { %v2761_v28 = vpop.permute.xlu1 %2760 }
0x157a   :  { %v4423_v37 = vpop.eup %4422 }
0x157b   :  { %v2518_v19 = vsel %vm208_vm2, %v4423_v37, 0.0 }
0x157c   :  { %2519 = vadd.xlane.f32.xlu0 %v2518_v19  ;;  %v2759_v32 = vpop.permute.xlu1 %2758 }
0x157e   :  { %v4425_v20 = vpop.eup %4424 }
0x157f   :  { %v2521_v21 = vsel %vm208_vm2, %v4425_v20, 0.0 }
0x1580   :  { %2522 = vadd.xlane.f32.xlu0 %v2521_v21 }
0x1596   :  { %2680 = vrot.lane.b32.xlu0 %v4966_v14, %s4560_s30 }
0x1605   :  { %v2520_v22 = vpop.xlane.xlu0 %2519 }
0x1606   :  { %4426 = vrcp.f32 %v2520_v22 }
0x1609   :  { %v2523_v23 = vpop.xlane.xlu0 %2522 }
0x160a   :  { %4428 = vrcp.f32 %v2523_v23 }
0x160d   :  { %v2681_v30 = vpop.permute.xlu0 %2680 }
0x1613   :  { %v4427_v25 = vpop.eup %4426 }
0x1614   :  { %v2526_v26 = vmul.f32 %v4427_v25, %v4423_v37 }
0x1616   :  { %4246 = vmatmul.mubr.msk.f32.vlgmr.msra.gmra.mxu0 %vm208_vm2, %v2526_v26 }
0x1617   :  { %v4429_v27 = vpop.eup %4428  ;;  %4254 = vmatpush3.xpose.msk.msra.mxu0 %vm208_vm2, %v2683_v24  ;;  %4255 = vmatprep.mubr.msk.f32.mxu0 %vm4553_vm1, %v4552_v36 }
0x1618   :  { %v2527_v29 = vmul.f32 %v4429_v27, %v4425_v20  ;;  %4263 = vmatprep.subr.mxu0 %v4552_v36 }
0x161a   :  { %4251 = vmatmul.mubr.msk.f32.vlgmr.msra.gmra.mxu1 %vm208_vm2, %v2527_v29  ;;  %4256 = vmatmul.mubr.msk.f32.vlgmr.msra.gmra.mxu0 %vm208_vm2, %v2681_v30 }
0x161b   :  { %4259 = vmatpush3.xpose.msk.msra.mxu1 %vm208_vm2, %v2761_v28  ;;  %4260 = vmatprep.mubr.msk.f32.mxu1 %vm4553_vm1, %v4552_v36 }
0x161c   :  { %4268 = vmatprep.subr.mxu1 %v4552_v36  ;;  %4265 = vmatprep.mubr.msk.f32.mxu0 %vm4553_vm1, %v4552_v36 }
0x161e   :  { %4261 = vmatmul.mubr.msk.f32.vlgmr.msra.gmra.mxu1 %vm208_vm2, %v2759_v32 }
0x161f   :  { %4270 = vmatprep.mubr.msk.f32.mxu1 %vm4553_vm1, %v4552_v36 }
0x16d6   :  { %v5056_v34 = vpop.f32.mrf.mxu0 }
0x16d8   :  { %v4247_v39 = vpop.f32.mrf.mxu0 }
0x16da   :  { %v5058_v40 = vpop.f32.mrf.mxu1  ;;  %v2754_v42 = vpop.f32.mrf.mxu0 }
0x16db   :  { %v2836_v44 = vmul.f32 0.35355338, %v2754_v42 }
0x16dc   :  { %v4252_v33 = vpop.f32.mrf.mxu1  ;;  %v4257_v45 = vpop.f32.mrf.mxu0 }
0x16dd   :  { %v2838_v31 = vsel %vm208_vm2, %v2836_v44, -inf }
0x16de   :  { %2839 = vmax.xlane.f32.xlu0 %v2838_v31  ;;  %v2832_v46 = vpop.f32.mrf.mxu1 }
0x16df   :  { %v2837_v47 = vmul.f32 0.35355338, %v2832_v46 }
0x16e0   :  { %v4262_v48 = vpop.f32.mrf.mxu1 }
0x16e1   :  { %v2841_v49 = vsel %vm208_vm2, %v2837_v47, -inf }
0x16e2   :  { %2842 = vmax.xlane.f32.xlu1 %v2841_v49 }
0x16f3   :  { %2936 = vrot.lane.b32.xlu1 %v4964_v12, %s4561_s12 }
0x16f4   :  { %2860 = vrot.lane.b32.xlu0 %v4966_v14, %s4561_s12 }
0x16f7   :  { %3014 = vrot.lane.b32.xlu1 %v4966_v14, %s4562_s0 }
0x16fb   :  { %3092 = vrot.lane.b32.xlu1 %v4964_v12, %s4562_s0 }
0x16ff   :  { %3090 = vrot.lane.b32.xlu1 %v4964_v12, %s4563_s8 }
0x1767   :  { %v2840_v50 = vpop.xlane.xlu0 %2839 }
0x1768   :  { %v2844_v51 = vsub.f32 %v2836_v44, %v2840_v50 }
0x176a   :  { %v2846_v52 = vmul.f32 1.442695, %v2844_v51 }
0x176b   :  { %v2861_v53 = vpop.permute.xlu0 %2860  ;;  %v2843_v56 = vpop.xlane.xlu1 %2842 }
0x176c   :  { %4430 = vpow2.f32 %v2846_v52  ;;  %v2845_v58 = vsub.f32 %v2837_v47, %v2843_v56  ;;  %4264 = vmatpush3.msra.mxu0 %v2861_v53  ;;  %v3927_v53 = vld [vmem:[%s5218_s4 + $0x30] sm:$0xff]  ;;  %v3926_v56 = vld [vmem:[%s5218_s4 + $0x28] sm:$0xff] }
0x176d   :  { %4273 = vmatprep.subr.mxu0 %v4552_v36 }
0x176e   :  { %v2848_v59 = vmul.f32 1.442695, %v2845_v58  ;;  %v3925_v58 = vld [vmem:[%s5218_s4 + $0x20] sm:$0xff] }
0x176f   :  { %v2937_v60 = vpop.permute.xlu1 %2936 }
0x1770   :  { %4432 = vpow2.f32 %v2848_v59  ;;  %4269 = vmatpush3.msra.mxu1 %v2937_v60 }
0x1771   :  { %4278 = vmatprep.subr.mxu1 %v4552_v36 }
0x1773   :  { %v3015_v4 = vpop.permute.xlu1 %3014 }
0x1777   :  { %v3093_v11 = vpop.permute.xlu1 %3092 }
0x1779   :  { %v4431_v61 = vpop.eup %4430 }
0x177a   :  { %v2850_v43 = vsel %vm208_vm2, %v4431_v61, 0.0 }
0x177b   :  { %2851 = vadd.xlane.f32.xlu0 %v2850_v43  ;;  %v3091_v17 = vpop.permute.xlu1 %3090 }
0x177d   :  { %v4433_v63 = vpop.eup %4432 }
0x177e   :  { %v2853_v1 = vsel %vm208_vm2, %v4433_v63, 0.0 }
0x177f   :  { %2854 = vadd.xlane.f32.xlu0 %v2853_v1 }
0x1795   :  { %3012 = vrot.lane.b32.xlu0 %v4966_v14, %s4563_s8 }
0x1804   :  { %v2852_v2 = vpop.xlane.xlu0 %2851 }
0x1805   :  { %4434 = vrcp.f32 %v2852_v2 }
0x1808   :  { %v2855_v3 = vpop.xlane.xlu0 %2854 }
0x1809   :  { %4436 = vrcp.f32 %v2855_v3 }
0x180c   :  { %v3013_v15 = vpop.permute.xlu0 %3012 }
0x1812   :  { %v4435_v5 = vpop.eup %4434 }
0x1813   :  { %v2858_v6 = vmul.f32 %v4435_v5, %v4431_v61 }
0x1815   :  { %4266 = vmatmul.mubr.msk.f32.vlgmr.msra.gmra.mxu0 %vm208_vm2, %v2858_v6 }
0x1816   :  { %v4437_v38 = vpop.eup %4436  ;;  %4274 = vmatpush3.xpose.msk.msra.mxu0 %vm208_vm2, %v3015_v4  ;;  %4275 = vmatprep.mubr.msk.f32.mxu0 %vm4553_vm1, %v4552_v36 }
0x1817   :  { %v2859_v13 = vmul.f32 %v4437_v38, %v4433_v63  ;;  %4283 = vmatprep.subr.mxu0 %v4552_v36 }
0x1819   :  { %4271 = vmatmul.mubr.msk.f32.vlgmr.msra.gmra.mxu1 %vm208_vm2, %v2859_v13  ;;  %4276 = vmatmul.mubr.msk.f32.vlgmr.msra.gmra.mxu0 %vm208_vm2, %v3013_v15 }
0x181a   :  { %4279 = vmatpush3.xpose.msk.msra.mxu1 %vm208_vm2, %v3093_v11  ;;  %4280 = vmatprep.mubr.msk.f32.mxu1 %vm4553_vm1, %v4552_v36 }
0x181b   :  { %4288 = vmatprep.subr.mxu1 %v4552_v36  ;;  %4285 = vmatprep.mubr.msk.f32.mxu0 %vm4553_vm1, %v4552_v36 }
0x181d   :  { %4281 = vmatmul.mubr.msk.f32.vlgmr.msra.gmra.mxu1 %vm208_vm2, %v3091_v17 }
0x181e   :  { %4290 = vmatprep.mubr.msk.f32.mxu1 %vm4553_vm1, %v4552_v36 }
0x18d5   :  { %v2932_v37 = vpop.f32.mrf.mxu0 }
0x18d7   :  { %v4267_v19 = vpop.f32.mrf.mxu0 }
0x18d9   :  { %v3008_v20 = vpop.f32.mrf.mxu1  ;;  %v3086_v21 = vpop.f32.mrf.mxu0 }
0x18da   :  { %v3168_v22 = vmul.f32 0.35355338, %v3086_v21 }
0x18db   :  { %v4272_v23 = vpop.f32.mrf.mxu1  ;;  %v4277_v24 = vpop.f32.mrf.mxu0 }
0x18dc   :  { %v3170_v25 = vsel %vm208_vm2, %v3168_v22, -inf }
0x18dd   :  { %3171 = vmax.xlane.f32.xlu0 %v3170_v25  ;;  %v3164_v26 = vpop.f32.mrf.mxu1 }
0x18de   :  { %v3169_v27 = vmul.f32 0.35355338, %v3164_v26 }
0x18df   :  { %v4282_v28 = vpop.f32.mrf.mxu1 }
0x18e0   :  { %v3173_v29 = vsel %vm208_vm2, %v3169_v27, -inf }
0x18e1   :  { %3174 = vmax.xlane.f32.xlu1 %v3173_v29 }
0x18f2   :  { %3268 = vrot.lane.b32.xlu1 %v4964_v12, %s4564_s13 }
0x18f6   :  { %3346 = vrot.lane.b32.xlu1 %v5056_v34, %s4550_s21 }
0x18fa   :  { %3348 = vrot.lane.b32.xlu1 %v5058_v40, %s4550_s21 }
0x18fe   :  { %3356 = vrot.lane.b32.xlu1 %v3008_v20, %s4565_s14 }
0x1966   :  { %v3172_v30 = vpop.xlane.xlu0 %3171 }
0x1967   :  { %v3176_v32 = vsub.f32 %v3168_v22, %v3172_v30 }
0x1969   :  { %v3178_v39 = vmul.f32 1.442695, %v3176_v32 }
0x196a   :  { %v3175_v42 = vpop.xlane.xlu1 %3174 }
0x196b   :  { %4438 = vpow2.f32 %v3178_v39  ;;  %v3177_v44 = vsub.f32 %v3169_v27, %v3175_v42  ;;  %v3507_v42 = vld [vmem:[#allocation2 + $0x30] sm:$0xff] }
0x196d   :  { %v3180_v33 = vmul.f32 1.442695, %v3177_v44  ;;  %v3506_v44 = vld [vmem:[#allocation2 + $0x28] sm:$0xff] }
0x196e   :  { %v3269_v45 = vpop.permute.xlu1 %3268 }
0x196f   :  { %4440 = vpow2.f32 %v3180_v33  ;;  %4289 = vmatpush3.msra.mxu1 %v3269_v45  ;;  %v3505_v33 = vld [vmem:[#allocation2 + $0x20] sm:$0xff] }
0x1972   :  { %v3347_v63 = vpop.permute.xlu1 %3346 }
0x1973   :  { %v3368_v3 = vsel %vm208_vm2, %v5018_v55, %v3347_v63  ;;  %v3382_v55 = vrot.slane %v4959_v10, %v1570_v16  ;;  %v3934_v63 = vld [vmem:[%s5220_s6 + $0x48] sm:$0xff] }
0x1976   :  { %v3349_v1 = vpop.permute.xlu1 %3348 }
0x1977   :  { %v3369_v11 = vsel %vm208_vm2, %v5020_v57, %v3349_v1  ;;  %v3933_v1 = vld [vmem:[%s5220_s6 + $0x40] sm:$0xff] }
0x1978   :  { %v4439_v31 = vpop.eup %4438 }
0x1979   :  { %v3182_v12 = vsel %vm208_vm2, %v4439_v31, 0.0 }
0x197a   :  { %3183 = vadd.xlane.f32.xlu0 %v3182_v12  ;;  %v3357_v4 = vpop.permute.xlu1 %3356 }
0x197b   :  { %v3371_v13 = vsel %vm1558_vm4, %v3369_v11, %v3357_v4 }
0x197c   :  { %v4441_v34 = vpop.eup %4440 }
0x197d   :  { %v3185_v46 = vsel %vm208_vm2, %v4441_v34, 0.0 }
0x197e   :  { %3186 = vadd.xlane.f32.xlu0 %v3185_v46 }
0x1994   :  { %3192 = vrot.lane.b32.xlu0 %v4966_v14, %s4564_s13  ;;  %v3928_v14 = vld [vmem:[%s5218_s4 + $0x38] sm:$0xff] }
0x1998   :  { %3354 = vrot.lane.b32.xlu0 %v2932_v37, %s4565_s14 }
0x1a03   :  { %v3184_v40 = vpop.xlane.xlu0 %3183 }
0x1a04   :  { %4442 = vrcp.f32 %v3184_v40 }
0x1a07   :  { %v3187_v47 = vpop.xlane.xlu0 %3186 }
0x1a08   :  { %4444 = vrcp.f32 %v3187_v47  ;;  %v3495_v47 = vrot.slane %v4959_v10, %v1683_v41  ;;  %v3940_v41 = vld [vmem:[%s5220_s6 + $0x78] sm:$0xff] }
0x1a0b   :  { %v3193_v48 = vpop.permute.xlu0 %3192 }
0x1a0c   :  { %4284 = vmatpush3.msra.mxu0 %v3193_v48 }
0x1a0d   :  { %4293 = vmatprep.subr.mxu0 %v3928_v14 }
0x1a0f   :  { %v3355_v2 = vpop.permute.xlu0 %3354 }
0x1a10   :  { %v3370_v5 = vsel %vm1558_vm4, %v3368_v3, %v3355_v2  ;;  %v3512_v2 = vrot.slane %v4959_v10, %v1699_v8  ;;  %v3616_v8 = vrot.slane %v4959_v10, %v1802_v18 }
0x1a11   :  { %v4443_v49 = vpop.eup %4442 }
0x1a12   :  { %v3190_v50 = vmul.f32 %v4443_v49, %v4439_v31 }
0x1a14   :  { %4286 = vmatmul.mubr.msk.f32.vlgmr.msra.gmra.mxu0 %vm208_vm2, %v3190_v50  ;;  %v3501_v50 = vrot.slane %v4959_v10, %v1689_v54  ;;  %v3939_v54 = vld [vmem:[%s5220_s6 + $0x70] sm:$0xff] }
0x1a15   :  { %v4445_v51 = vpop.eup %4444  ;;  %4294 = vmatpush3.msra.mxu0 %v3928_v14 }
0x1a16   :  { %v3191_v52 = vmul.f32 %v4445_v51, %v4441_v34  ;;  %4295 = vmatprep.subr.mxu0 %v3927_v53 }
0x1a17   :  { %4296 = vmatpush3.msra.mxu0 %v3927_v53 }
0x1a18   :  { %4291 = vmatmul.mubr.msk.f32.vlgmr.msra.gmra.mxu1 %vm208_vm2, %v3191_v52  ;;  %4297 = vmatprep.subr.mxu0 %v3926_v56 }
0x1a19   :  { %4298 = vmatpush3.msra.mxu0 %v3926_v56 }
0x1a1a   :  { %4299 = vmatprep.subr.mxu0 %v3925_v58 }
0x1a1b   :  { %4300 = vmatpush3.msra.mxu0 %v3925_v58 }
0x1a1c   :  { %4315 = vmatprep.subr.mxu0 %v3940_v41 }
0x1ad4   :  { %v3264_v59 = vpop.f32.mrf.mxu0 }
0x1ad5   :  { %3362 = vrot.lane.b32.xlu0 %v3264_v59, %s4566_s1  ;;  %v3938_v59 = vld [vmem:[%s5220_s6 + $0x68] sm:$0xff] }
0x1ad6   :  { %v4287_v60 = vpop.f32.mrf.mxu0 }
0x1ad7   :  { %v3937_v60 = vld [vmem:[%s5220_s6 + $0x60] sm:$0xff] }
0x1ad8   :  { %v3340_v61 = vpop.f32.mrf.mxu1 }
0x1ad9   :  { %3364 = vrot.lane.b32.xlu1 %v3340_v61, %s4566_s1  ;;  %v3936_v61 = vld [vmem:[%s5220_s6 + $0x58] sm:$0xff] }
0x1ada   :  { %v4292_v43 = vpop.f32.mrf.mxu1 }
0x1adb   :  { %v3935_v43 = vld [vmem:[%s5220_s6 + $0x50] sm:$0xff]  ;;  %s4567_s6 = smov [#allocation7]  }
0x1adc   :  { %s3833_s22 = sshll.u32 %s4567_s6, 4  ;;  %s3834_s22 = int_to_ptr.vmem [resolvable:$true] %s3833_s22 }
0x1add   :  { %s4500_s7 = scalar_lea.vmem %s3834_s22, 256  ;;  %p4505_p11 = scmp.lt.s32.totalorder %s3834_s22, %s3834_s22 }
0x1ade   :  { %p4501_p10 = scmp.ne.s32.totalorder %s3834_s22, %s4500_s7  ;;  %p4506_p12 = scmp.lt.s32.totalorder %s4500_s7, %s4500_s7 }
0x1ae0   :  { %p4507_p13 = por %p4506_p12, %p4505_p11 }
0x1ae2   :  { %p4508_p0 = pnand %p4507_p13, %p4501_p10 }
0x1b47   :  { %v3363_v6 = vpop.permute.xlu0 %3362 }
0x1b48   :  { %v3372_v38 = vsel %vm1561_vm3, %v3370_v5, %v3363_v6 }
0x1b49   :  { %4301 = vmatprep.mubr.msk.f32.mxu0 %vm71_vm0, %v3372_v38 }
0x1b4b   :  { %v3365_v15 = vpop.permute.xlu1 %3364 }
0x1b4c   :  { %v3373_v17 = vsel %vm1561_vm3, %v3371_v13, %v3365_v15 }
0x1b4d   :  { %4302 = vmatmul.mubr.msk.f32.vlgmr.msra.gmra.mxu0 %vm71_vm0, %v3373_v17 }
0x1b4e   :  { %4316 = vmatpush3.msra.mxu0 %v3940_v41 }
0x1b4f   :  { %4317 = vmatprep.subr.mxu0 %v3939_v54 }
0x1b50   :  { %4318 = vmatpush3.msra.mxu0 %v3939_v54 }
0x1b51   :  { %4319 = vmatprep.subr.mxu0 %v3938_v59 }
0x1b52   :  { %4320 = vmatpush3.msra.mxu0 %v3938_v59 }
0x1b53   :  { %4321 = vmatprep.subr.mxu0 %v3937_v60 }
0x1b54   :  { %4322 = vmatpush3.msra.mxu0 %v3937_v60 }
0x1b55   :  { %4323 = vmatprep.subr.mxu0 %v3936_v61 }
0x1b56   :  { %4324 = vmatpush3.msra.mxu0 %v3936_v61 }
0x1b57   :  { %4325 = vmatprep.subr.mxu0 %v3935_v43 }
0x1b58   :  { %4326 = vmatpush3.msra.mxu0 %v3935_v43 }
0x1b59   :  { %4327 = vmatprep.subr.mxu0 %v3934_v63 }
0x1b5a   :  { %4328 = vmatpush3.msra.mxu0 %v3934_v63 }
0x1b5b   :  { %4329 = vmatprep.subr.mxu0 %v3933_v1 }
0x1b5c   :  { %4330 = vmatpush3.msra.mxu0 %v3933_v1 }
0x1c0d   :  { %v4303_v37 = vpop.f32.mrf.mxu0 }
0x1c0e   :  { %v3461_v19 = vadd.f32 %v4303_v37, %v3382_v55 }
0x1c0f   :  { %v3455_v20 = vpop.f32.mrf.mxu0 }
0x1c10   :  { %v3465_v21 = vadd.f32 %v3461_v19, %v4948_v9  ;;  %v3456_v22 = vadd.f32 %v3455_v20, %v3382_v55 }
0x1c12   :  { %v3464_v23 = vadd.f32 %v3456_v22, %v4946_v7  ;;  %v3469_v57 = vsel %vm71_vm0, %v3465_v21, 0.0  ;;  %v3508_v7 = vld [vmem:[#allocation2 + $0x38] sm:$0xff] }
0x1c13   :  { %3470 = vadd.xlane.f32.xlu1 %v3469_v57  ;;  %4304 = vmatprep.subr.mxu1 %v3508_v7 }
0x1c14   :  { %v3466_v24 = vsel %vm71_vm0, %v3464_v23, 0.0  ;;  %4305 = vmatpush3.msra.mxu1 %v3508_v7 }
0x1c15   :  { %3467 = vadd.xlane.f32.xlu0 %v3466_v24  ;;  %4306 = vmatprep.subr.mxu1 %v3507_v42 }
0x1c16   :  { %4307 = vmatpush3.msra.mxu1 %v3507_v42 }
0x1c17   :  { %4308 = vmatprep.subr.mxu1 %v3506_v44 }
0x1c18   :  { %4309 = vmatpush3.msra.mxu1 %v3506_v44 }
0x1c19   :  { %4310 = vmatprep.subr.mxu1 %v3505_v33 }
0x1c1a   :  { %4311 = vmatpush3.msra.mxu1 %v3505_v33  ;;  %v3744_v33 = vld [vmem:[#allocation5 + $0x18] sm:$0xff] }
0x1c1b   :  { %4334 = vmatprep.subr.mxu1 %v4552_v36 }
0x1c9c   :  { %v3471_v25 = vpop.xlane.xlu1 %3470 }
0x1c9d   :  { %v3473_v26 = vmul.f32 0.03125, %v3471_v25 }
0x1c9e   :  { %v3468_v27 = vpop.xlane.xlu0 %3467 }
0x1c9f   :  { %v3472_v28 = vmul.f32 0.03125, %v3468_v27  ;;  %v3475_v29 = vsub.f32 %v3465_v21, %v3473_v26 }
0x1ca1   :  { %v3474_v16 = vsub.f32 %v3464_v23, %v3472_v28  ;;  %v3477_v39 = vmul.f32 %v3475_v29, %v3475_v29 }
0x1ca3   :  { %v3476_v30 = vmul.f32 %v3474_v16, %v3474_v16  ;;  %v3481_v9 = vsel %vm71_vm0, %v3477_v39, 0.0 }
0x1ca5   :  { %v3478_v32 = vsel %vm71_vm0, %v3476_v30, 0.0 }
0x1ca6   :  { %3479 = vadd.xlane.f32.xlu0 %v3478_v32 }
0x1caa   :  { %3482 = vadd.xlane.f32.xlu0 %v3481_v9 }
0x1d2f   :  { %v3480_v45 = vpop.xlane.xlu0 %3479 }
0x1d30   :  { %v3484_v31 = vmul.f32 0.03125, %v3480_v45  ;;  %v3743_v45 = vld [vmem:[#allocation5 + $0x10] sm:$0xff] }
0x1d32   :  { %v3486_v12 = vadd.f32 1e-12, %v3484_v31  ;;  %v3742_v31 = vld [vmem:[#allocation5 + $0x8] sm:$0xff] }
0x1d33   :  { %v3483_v34 = vpop.xlane.xlu0 %3482 }
0x1d34   :  { %4446 = vrsqrt.f32 %v3486_v12  ;;  %v3485_v46 = vmul.f32 0.03125, %v3483_v34  ;;  %v3741_v12 = vld [vmem:[#allocation5] sm:$0xff] }
0x1d36   :  { %v3487_v40 = vadd.f32 1e-12, %v3485_v46 }
0x1d38   :  { %4448 = vrsqrt.f32 %v3487_v40 }
0x1d41   :  { %v4447_v48 = vpop.eup %4446 }
0x1d42   :  { %v3490_v49 = vmul.f32 %v4447_v48, %v3474_v16 }
0x1d44   :  { %v3496_v51 = vmul.f32 %v3495_v47, %v3490_v49 }
0x1d45   :  { %v4449_v52 = vpop.eup %4448 }
0x1d46   :  { %v3491_v14 = vmul.f32 %v4449_v52, %v3475_v29  ;;  %v3502_v53 = vadd.f32 %v3501_v50, %v3496_v51  ;;  %v3735_v52 = vrot.slane %v4959_v10, %v1922_v0 }
0x1d48   :  { %v3497_v56 = vmul.f32 %v3495_v47, %v3491_v14  ;;  %4312 = vmatprep.mubr.msk.f32.mxu1 %vm71_vm0, %v3502_v53 }
0x1d4a   :  { %v3503_v58 = vadd.f32 %v3501_v50, %v3497_v56  ;;  %v3729_v50 = vrot.slane %v4959_v10, %v1916_v62 }
0x1d4c   :  { %4313 = vmatmul.mubr.msk.f32.vlgmr.msra.gmra.mxu1 %vm71_vm0, %v3503_v58 }
0x1d4d   :  { %4342 = vmatprep.mubr.msk.f32.mxu1 %vm4553_vm1, %v4552_v36  ;;  %4335 = vmatpush3.msra.mxu1 %v3744_v33 }
0x1d4e   :  { %4336 = vmatprep.subr.mxu1 %v4552_v36 }
0x1d4f   :  { %4337 = vmatpush3.msra.mxu1 %v3743_v45 }
0x1d50   :  { %4338 = vmatprep.subr.mxu1 %v4552_v36 }
0x1d51   :  { %4339 = vmatpush3.msra.mxu1 %v3742_v31 }
0x1d52   :  { %4340 = vmatprep.subr.mxu1 %v4552_v36 }
0x1d53   :  { %4341 = vmatpush3.msra.mxu1 %v3741_v12 }
0x1e0c   :  { %v4314_v3 = vpop.f32.mrf.mxu1 }
0x1e0d   :  { %v3591_v4 = vadd.f32 %v4314_v3, %v3512_v2 }
0x1e0e   :  { %v3585_v5 = vpop.f32.mrf.mxu1 }
0x1e0f   :  { %v3597_v6 = vmul.f32 0.70710677, %v3591_v4  ;;  %v3586_v38 = vadd.f32 %v3585_v5, %v3512_v2  ;;  %v3595_v19 = vmul.f32 0.5, %v3591_v4 }
0x1e11   :  { %4450 = verf.f32 %v3597_v6  ;;  %v3596_v11 = vmul.f32 0.70710677, %v3586_v38  ;;  %v3594_v55 = vmul.f32 0.5, %v3586_v38 }
0x1e13   :  { %4452 = verf.f32 %v3596_v11 }
0x1e1e   :  { %v4451_v13 = vpop.eup %4450 }
0x1e1f   :  { %v3601_v17 = vadd.f32 1.0, %v4451_v13 }
0x1e20   :  { %v4453_v15 = vpop.eup %4452 }
0x1e21   :  { %v3600_v37 = vadd.f32 1.0, %v4453_v15  ;;  %v3603_v21 = vmul.f32 %v3601_v17, %v3595_v19 }
0x1e23   :  { %v3602_v20 = vmul.f32 %v3600_v37, %v3594_v55 }
0x1e25   :  { %4331 = vmatprep.mubr.msk.f32.mxu0 %vm1804_vm5, %v3602_v20 }
0x1e26   :  { %4332 = vmatmul.mubr.msk.f32.vlgmr.msra.gmra.mxu0 %vm1804_vm5, %v3603_v21 }
0x1ee6   :  { %v4333_v22 = vpop.f32.mrf.mxu0 }
0x1ee7   :  { %v3695_v23 = vadd.f32 %v4333_v22, %v3616_v8 }
0x1ee8   :  { %v3689_v57 = vpop.f32.mrf.mxu0 }
0x1ee9   :  { %v3699_v24 = vadd.f32 %v3695_v23, %v3503_v58  ;;  %v3690_v25 = vadd.f32 %v3689_v57, %v3616_v8 }
0x1eeb   :  { %v3698_v26 = vadd.f32 %v3690_v25, %v3502_v53  ;;  %v3703_v27 = vsel %vm71_vm0, %v3699_v24, 0.0 }
0x1eec   :  { %3704 = vadd.xlane.f32.xlu1 %v3703_v27 }
0x1eed   :  { %v3700_v28 = vsel %vm71_vm0, %v3698_v26, 0.0 }
0x1eee   :  { %3701 = vadd.xlane.f32.xlu0 %v3700_v28 }
0x1f75   :  { %v3705_v29 = vpop.xlane.xlu1 %3704 }
0x1f76   :  { %v3707_v16 = vmul.f32 0.03125, %v3705_v29 }
0x1f77   :  { %v3702_v30 = vpop.xlane.xlu0 %3701 }
0x1f78   :  { %v3709_v32 = vsub.f32 %v3699_v24, %v3707_v16  ;;  %v3706_v39 = vmul.f32 0.03125, %v3702_v30 }
0x1f7a   :  { %v3708_v9 = vsub.f32 %v3698_v26, %v3706_v39  ;;  %v3711_v7 = vmul.f32 %v3709_v32, %v3709_v32 }
0x1f7c   :  { %v3715_v18 = vsel %vm71_vm0, %v3711_v7, 0.0  ;;  %v3710_v42 = vmul.f32 %v3708_v9, %v3708_v9 }
0x1f7d   :  { %3716 = vadd.xlane.f32.xlu1 %v3715_v18 }
0x1f7e   :  { %v3712_v44 = vsel %vm71_vm0, %v3710_v42, 0.0 }
0x1f7f   :  { %3713 = vadd.xlane.f32.xlu0 %v3712_v44 }
0x2006   :  { %v3717_v34 = vpop.xlane.xlu1 %3716 }
0x2007   :  { %v3719_v46 = vmul.f32 0.03125, %v3717_v34 }
0x2008   :  { %v3714_v40 = vpop.xlane.xlu0 %3713 }
0x2009   :  { %v3721_v47 = vadd.f32 1e-12, %v3719_v46  ;;  %v3718_v48 = vmul.f32 0.03125, %v3714_v40 }
0x200b   :  { %4454 = vrsqrt.f32 %v3721_v47  ;;  %v3720_v49 = vadd.f32 1e-12, %v3718_v48 }
0x200d   :  { %4456 = vrsqrt.f32 %v3720_v49 }
0x2018   :  { %v4455_v51 = vpop.eup %4454 }
0x2019   :  { %v3725_v14 = vmul.f32 %v4455_v51, %v3709_v32 }
0x201a   :  { %v4457_v36 = vpop.eup %4456 }
0x201b   :  { %v3731_v53 = vmul.f32 %v3729_v50, %v3725_v14  ;;  %v3724_v56 = vmul.f32 %v4457_v36, %v3708_v9 }
0x201d   :  { %v3737_v58 = vadd.f32 %v3735_v52, %v3731_v53  ;;  %v3730_v41 = vmul.f32 %v3729_v50, %v3724_v56 }
0x201f   :  { %3739 = vst.msk [vmem:[#allocation7 + $0x8] sm:$0xff] %vm71_vm0, %v3737_v58  ;;  %v3736_v54 = vadd.f32 %v3735_v52, %v3730_v41 }
0x2021   :  { %3738 = vst.msk [vmem:[#allocation7] sm:$0xff] %vm71_vm0, %v3736_v54 }
0x2028   :  { %v3740_v59 = vld [vmem:[#allocation7] ss:$8 sm:$0x3] }
0x2029   :  { %4343 = vmatmul.mubr.msk.f32.vlgmr.msra.gmra.mxu1 %vm71_vm0, %v3740_v59 }
0x202a   :  { %4511 = shalt.err (!%p4508_p0)
}
0x202b   :  { %3839 = dma.vmem_to_hbm [thread:$0]  %s3834_s22, 256, %s5224_s10, [#allocation4], %s4549_s20, %s4549_s20, %s4550_s21   ;;  %vm3826_vm6 = vcmask 254976  }
0x202c   :  { %v3943_v35 = vld [vmem:[%s5223_s9] ss:$0 sm:$0xff]  ;;  %s4568_s5 = smov [#allocation8]  }
0x202d   :  { %s3846_s29 = sshll.u32 %s4568_s5, 4  ;;  %s3847_s29 = int_to_ptr.vmem [resolvable:$true] %s3846_s29 }
0x202e   :  { %s4520_s30 = scalar_lea.vmem %s3847_s29, 32  ;;  %p4525_p2 = scmp.lt.s32.totalorder %s3847_s29, %s3847_s29 }
0x202f   :  { %p4521_p1 = scmp.ne.s32.totalorder %s3847_s29, %s4520_s30  ;;  %p4526_p3 = scmp.lt.s32.totalorder %s4520_s30, %s4520_s30 }
0x2031   :  { %p4527_p4 = por %p4526_p3, %p4525_p2 }
0x2033   :  { %p4528_p5 = pnand %p4527_p4, %p4521_p1 }
0x20e9   :  { %v3821_v62 = vpop.f32.mrf.mxu1 }
0x20ea   :  { %v3822_v0 = vadd.f32 %v3943_v35, %v3821_v62 }
0x20eb   :  { %v4344_v10 = vpop.f32.mrf.mxu1 }
0x20ec   :  { %4458 = vtanh.f32 %v3822_v0 }
0x20f9   :  { %v4459_v60 = vpop.eup %4458 }
0x20fa   :  { %3827 = vst.msk [vmem:[#allocation8] sm:$0x3] %vm3826_vm6, %v4459_v60 }
0x20fb   :  { %4531 = shalt.err (!%p4528_p5)
}
0x20fc   :  { %3849 = dma.vmem_to_hbm [thread:$0]  %s3847_s29, 32, %s5225_s11, [#allocation9]  }
0x20fd   :  { %4544 = dma.done.wait [#allocation4], 256  }
0x20fe   :  { %4545 = vsyncadd [#allocation4], 4294967040 }
0x20ff   :  { %4546 = dma.done.wait [#allocation9], 32  }
0x2100   :  { %4547 = vsyncadd [#allocation9], 4294967264 }
0x2101   :  { %3856 = vsyncpa [#allocation3], 1 }
0x2102   :  { %3857 = vsyncpa [#allocation6], 1 }
0x2103   :  { %3858 = vsyncpa [#allocation4], 1 }
0x2104   :  { %3859 = vsyncpa [#allocation9], 1 }

</bundles_post_ra>
